<compile_context>
chip_gen: v7x
topology: tpu7x:2x2x1
jax: 0.10.0
libtpu: 0.0.40
codegen_flags: <defaults>
</compile_context>

<pallas_src>
import math
import functools

import jax
import jax.numpy as jnp
from jax.experimental import pallas as pl
from jax.experimental.pallas import tpu as pltpu


# ----------------------------------------------------------------------------
# in-kernel helpers (pure jnp, traced inside the Pallas kernel body)
# ----------------------------------------------------------------------------
def _gelu_new(x):
    # 0.5 * x * (1 + tanh(sqrt(2/pi) * (x + 0.044715 * x^3)))
    return 0.5 * x * (1.0 + jnp.tanh(math.sqrt(2.0 / math.pi)
                                     * (x + 0.044715 * x * x * x)))


def _layer_norm(x, gamma, beta, eps):
    mu = jnp.mean(x, axis=-1, keepdims=True)
    var = jnp.mean((x - mu) ** 2, axis=-1, keepdims=True)
    return (x - mu) * jax.lax.rsqrt(var + eps) * gamma + beta


# ----------------------------------------------------------------------------
# Single fused kernel: linear_to_hidden + n_layers x shared AlbertLayer.
# Each grid program owns one (S, ...) sequence; weights have constant block
# indices so they stay VMEM-resident across the whole grid.
# ----------------------------------------------------------------------------
def transformer_kernel(x_ref,                                    # (S, E)
                       we_ref, be_ref,                           # emb (E,H), (1,H)
                       wqkv_ref, bqkv_ref,                       # (H,3H), (1,3H)  (Q pre-scaled)
                       wd_ref, bd_ref,                           # dense (H,H), (1,H)
                       g1_ref, b1_ref,                           # LN1
                       wff_ref, bff_ref,                         # (H,F), (1,F)
                       wfo_ref, bfo_ref,                         # (F,H), (1,H)
                       g2_ref, b2_ref,                           # LN2
                       o_ref,                                    # (S, H)
                       ctx_ref,                                  # VMEM scratch (S, H) bf16
                       *, n_layers, n_head, attn_size, eps, cdtype,
                       elementwise_bf16, f_chunk):
    S = x_ref.shape[0]
    H = wd_ref.shape[0]
    F = wff_ref.shape[1]
    d = attn_size

    # --- linear_to_hidden (fused into the same kernel) ---
    h0 = (jnp.dot(x_ref[...].astype(cdtype), we_ref[...],
                  preferred_element_type=jnp.float32) + be_ref[...])    # (S, H) f32

    def layer_body(_, h):
        hb = h.astype(cdtype)

        # ---- fused QKV: one wide (S,H)@(H,3H) MXU pass (softmax scale folded
        #      into the Q weight/bias on the host) ----
        qkv = (jnp.dot(hb, wqkv_ref[...], preferred_element_type=jnp.float32)
               + bqkv_ref[...]).astype(cdtype)                           # (S, 3H)

        # ---- per-head attention; context assembled in VMEM scratch so the
        #      head merge is a single (S,H)@(H,H) matmul below ----
        for hh in range(n_head):
            qh = qkv[:, hh * d:(hh + 1) * d]                              # (S, d)
            kh = qkv[:, H + hh * d:H + (hh + 1) * d]
            vh = qkv[:, 2 * H + hh * d:2 * H + (hh + 1) * d]

            s = jnp.einsum('qd,kd->qk', qh, kh,
                           preferred_element_type=jnp.float32)            # (S, S) f32
            s = s - jnp.max(s, axis=-1, keepdims=True)                    # stable softmax
            if elementwise_bf16:
                s = s.astype(cdtype)                                      # bf16 EUP exp (v6e/v7x)
            p = jnp.exp(s)
            denom = jnp.sum(p, axis=-1, keepdims=True, dtype=jnp.float32)
            inv = pl.reciprocal(denom, approx=True)                       # EUP slot
            p = (p * inv.astype(p.dtype)).astype(cdtype)

            ctx_h = jnp.dot(p, vh, preferred_element_type=jnp.float32)    # (S, d)
            ctx_ref[:, hh * d:(hh + 1) * d] = ctx_h.astype(ctx_ref.dtype)

        # ---- head merge + output projection: ONE MXU matmul with K = H ----
        proj = (jnp.dot(ctx_ref[...], wd_ref[...],
                        preferred_element_type=jnp.float32) + bd_ref[...])  # (S, H)
        hidden = _layer_norm(h + proj, g1_ref[...], b1_ref[...], eps)

        # ---- feed-forward block, chunked over F (caps the (S,F) activation) ----
        hidden_b = hidden.astype(cdtype)
        acc = jnp.zeros((S, H), jnp.float32)
        for f0 in range(0, F, f_chunk):
            pre = (jnp.dot(hidden_b, wff_ref[:, f0:f0 + f_chunk],
                           preferred_element_type=jnp.float32)
                   + bff_ref[:, f0:f0 + f_chunk])
            if elementwise_bf16:
                pre = pre.astype(cdtype)                                  # bf16 tanh (v6e/v7x)
            act = _gelu_new(pre).astype(cdtype)
            acc = acc + jnp.dot(act, wfo_ref[f0:f0 + f_chunk, :],
                                preferred_element_type=jnp.float32)
        ffo = acc + bfo_ref[...]
        return _layer_norm(ffo + hidden, g2_ref[...], b2_ref[...], eps)

    # ALBERT weight sharing: the SAME layer weights applied n_layers times.
    h = jax.lax.fori_loop(0, n_layers, layer_body, h0)
    o_ref[...] = h.astype(o_ref.dtype)


# ----------------------------------------------------------------------------
# Wrapper: one-time host-side weight prep (fused+scaled QKV, bf16 casts) and a
# single pallas_call over the batch grid.
# ----------------------------------------------------------------------------
def _device_defaults():
    """(elementwise_bf16, vmem_limit_bytes) chosen from the TPU generation."""
    try:
        kind = jax.devices()[0].device_kind.lower()
    except Exception:
        kind = ""
    if "v7" in kind or "tpu7" in kind:
        return True, 48 * 1024 * 1024        # v7x: 64 MiB physical VMEM per TC
    if "v6" in kind:
        return True, 100 * 1024 * 1024       # v6e: bf16 VPU/EUP, 128 MiB VMEM
    if "v5" in kind:
        return False, 100 * 1024 * 1024      # v5e/v5p: no bf16 VPU/EUP path
    return False, 64 * 1024 * 1024           # unknown / older: conservative


def _chunk(total, target):
    """Largest convenient chunk <= target that divides `total` (or `total`)."""
    return total if (total <= target or total % target != 0) else target


def transformer_forward(x, params, *, n_layers, n_head, attn_size, eps,
                        compute_dtype=jnp.bfloat16):
    B, S, E = x.shape
    H = params["w_emb"].shape[1]
    F = params["wff"].shape[1]
    d = attn_size
    assert n_head * d == H

    cd = compute_dtype
    f32 = lambda a: a.astype(jnp.float32)
    elementwise_bf16, vmem_limit = _device_defaults()
    f_chunk = _chunk(F, 2048)

    # Fused QKV weight/bias (H, 3H) / (1, 3H); 1/sqrt(d) folded into Q cols/bias.
    scale = 1.0 / math.sqrt(attn_size)
    wqkv = jnp.concatenate([params["wq"] * scale, params["wk"], params["wv"]],
                           axis=1).astype(cd)
    bqkv = jnp.concatenate([params["bq"] * scale, params["bk"], params["bv"]],
                           axis=1).astype(jnp.float32)

    we = params["w_emb"].astype(cd)
    wd = params["wd"].astype(cd)
    wff = params["wff"].astype(cd)
    wfo = params["wfo"].astype(cd)

    kern = functools.partial(transformer_kernel, n_layers=n_layers,
                             n_head=n_head, attn_size=d, eps=eps, cdtype=cd,
                             elementwise_bf16=elementwise_bf16, f_chunk=f_chunk)

    def wspec(shape):
        nd = len(shape)
        # Constant block index -> weight stays VMEM-resident for the whole grid.
        # TODO(synk): pipeline_mode=pl.Buffered(1) here would avoid double-buffering
        #             these constant blocks on VMEM-tight v7x.
        return pl.BlockSpec(shape, lambda b, _n=nd: (0,) * _n)

    x_spec = pl.BlockSpec((None, S, E), lambda b: (b, 0, 0))   # kernel sees (S, E)
    o_spec = pl.BlockSpec((None, S, H), lambda b: (b, 0, 0))   # kernel sees (S, H)

    in_specs = [
        x_spec,
        wspec((E, H)), wspec((1, H)),               # linear_to_hidden
        wspec((H, 3 * H)), wspec((1, 3 * H)),       # fused QKV (Q pre-scaled)
        wspec((H, H)), wspec((1, H)),               # dense + bias
        wspec((1, H)), wspec((1, H)),               # layer_norm 1 (gamma, beta)
        wspec((H, F)), wspec((1, F)),               # feedforward
        wspec((F, H)), wspec((1, H)),               # feedforward_out
        wspec((1, H)), wspec((1, H)),               # layer_norm 2 (gamma, beta)
    ]

    return pl.pallas_call(
        kern,
        out_shape=jax.ShapeDtypeStruct((B, S, H), jnp.float32),
        grid=(B,),
        in_specs=in_specs,
        out_specs=o_spec,
        scratch_shapes=[pltpu.VMEM((S, H), cd)],    # per-layer merged-head context
        compiler_params=pltpu.CompilerParams(
            dimension_semantics=("parallel",),
            vmem_limit_bytes=vmem_limit),
    )(x, we, f32(params["b_emb"]),
      wqkv, bqkv, wd, f32(params["bd"]),
      f32(params["g1"]), f32(params["be1"]),
      wff, f32(params["bff"]), wfo, f32(params["bfo"]),
      f32(params["g2"]), f32(params["be2"]))


# ----------------------------------------------------------------------------
# Pure-JAX f32 reference (mirrors the PyTorch module) for a sanity check.
# ----------------------------------------------------------------------------
def reference_forward(x, params, *, n_layers, n_head, attn_size, eps):
    d = attn_size
    h = x @ params["w_emb"] + params["b_emb"]
    B, S, H = h.shape
    for _ in range(n_layers):
        q = h @ params["wq"] + params["bq"]
        k = h @ params["wk"] + params["bk"]
        v = h @ params["wv"] + params["bv"]

        def split(t):  # (B,S,H) -> (B, n_head, S, d)
            return t.reshape(B, S, n_head, d).transpose(0, 2, 1, 3)

        q, k, v = split(q), split(k), split(v)
        s = (q @ jnp.swapaxes(k, -1, -2)) / math.sqrt(d)
        p = jax.nn.softmax(s, axis=-1)
        ctx = (p @ v).transpose(0, 2, 1, 3).reshape(B, S, H)
        proj = ctx @ params["wd"] + params["bd"]
        hidden = _layer_norm(h + proj, params["g1"], params["be1"], eps)
        ff = _gelu_new(hidden @ params["wff"] + params["bff"])
        ffo = ff @ params["wfo"] + params["bfo"]
        h = _layer_norm(ffo + hidden, params["g2"], params["be2"], eps)
    return h


# ----------------------------------------------------------------------------
def init_params(key, n_embed, n_hidden, n_hidden_ff):
    ks = jax.random.split(key, 7)
    std = 0.02

    def lin(k, fan_in, fan_out):
        w = jax.random.normal(k, (fan_in, fan_out), jnp.float32) * std
        b = jnp.zeros((1, fan_out), jnp.float32)
        return w, b

    w_emb, b_emb = lin(ks[0], n_embed, n_hidden)
    wq, bq = lin(ks[1], n_hidden, n_hidden)
    wk, bk = lin(ks[2], n_hidden, n_hidden)
    wv, bv = lin(ks[3], n_hidden, n_hidden)
    wd, bd = lin(ks[4], n_hidden, n_hidden)
    wff, bff = lin(ks[5], n_hidden, n_hidden_ff)
    wfo, bfo = lin(ks[6], n_hidden_ff, n_hidden)
    ones = jnp.ones((1, n_hidden), jnp.float32)
    zeros = jnp.zeros((1, n_hidden), jnp.float32)
    return dict(w_emb=w_emb, b_emb=b_emb,
                wq=wq, bq=bq, wk=wk, bk=bk, wv=wv, bv=bv,
                wd=wd, bd=bd, g1=ones, be1=zeros,
                wff=wff, bff=bff, wfo=wfo, bfo=bfo, g2=ones, be2=zeros)


# ----------------------------------------------------------------------------
if __name__ == "__main__":
    # small config consistent with the module's forward
    n_embed = 32
    n_hidden = 32
    n_head = 4
    attention_size = n_hidden // n_head   # 8
    n_hidden_ff = 64
    n_layers = 2
    eps = 1e-12

    B, S = 2, 8

    key = jax.random.PRNGKey(0)
    k_x, k_p = jax.random.split(key)
    x = jax.random.uniform(k_x, (B, S, n_embed), jnp.float32)
    params = init_params(k_p, n_embed, n_hidden, n_hidden_ff)

    out = transformer_forward(x, params, n_layers=n_layers, n_head=n_head,
                              attn_size=attention_size, eps=eps)
    out = jax.block_until_ready(out)

    ref = reference_forward(x, params, n_layers=n_layers, n_head=n_head,
                            attn_size=attention_size, eps=eps)

    assert out.shape == (B, S, n_hidden)
    assert bool(jnp.all(jnp.isfinite(out)))
    max_err = float(jnp.max(jnp.abs(out - ref)))
    assert max_err < 0.1, f"kernel vs reference max abs err = {max_err}"
    print("KERNEL_OK")
</pallas_src>

<mosaic_0001>
module attributes {stable_mosaic.version = 11 : i64} {
  func.func @transformer_kernel(%arg0: i32, %arg1: memref<1x8x32xf32, #tpu.memory_space<vmem>>, %arg2: memref<32x32xbf16, #tpu.memory_space<vmem>>, %arg3: memref<1x32xf32, #tpu.memory_space<vmem>>, %arg4: memref<32x96xbf16, #tpu.memory_space<vmem>>, %arg5: memref<1x96xf32, #tpu.memory_space<vmem>>, %arg6: memref<32x32xbf16, #tpu.memory_space<vmem>>, %arg7: memref<1x32xf32, #tpu.memory_space<vmem>>, %arg8: memref<1x32xf32, #tpu.memory_space<vmem>>, %arg9: memref<1x32xf32, #tpu.memory_space<vmem>>, %arg10: memref<32x64xbf16, #tpu.memory_space<vmem>>, %arg11: memref<1x64xf32, #tpu.memory_space<vmem>>, %arg12: memref<64x32xbf16, #tpu.memory_space<vmem>>, %arg13: memref<1x32xf32, #tpu.memory_space<vmem>>, %arg14: memref<1x32xf32, #tpu.memory_space<vmem>>, %arg15: memref<1x32xf32, #tpu.memory_space<vmem>>, %arg16: memref<1x8x32xf32, #tpu.memory_space<vmem>>, %arg17: memref<8x32xbf16, #tpu.memory_space<vmem>>) attributes {dimension_semantics = [#tpu.dimension_semantics<parallel>], iteration_bounds = array<i64: 2>, scalar_prefetch = 0 : i64, scratch_operands = 1 : i64, tpu.core_type = #tpu.core_type<tc>, window_params = [{transform_indices = @transform_0, window_bounds = array<i64: 1, 8, 32>}, {pipeline_mode = #tpu.pipeline_mode<synchronous>, transform_indices = @transform_1, window_bounds = array<i64: 32, 32>}, {pipeline_mode = #tpu.pipeline_mode<synchronous>, transform_indices = @transform_2, window_bounds = array<i64: 1, 32>}, {pipeline_mode = #tpu.pipeline_mode<synchronous>, transform_indices = @transform_3, window_bounds = array<i64: 32, 96>}, {pipeline_mode = #tpu.pipeline_mode<synchronous>, transform_indices = @transform_4, window_bounds = array<i64: 1, 96>}, {pipeline_mode = #tpu.pipeline_mode<synchronous>, transform_indices = @transform_5, window_bounds = array<i64: 32, 32>}, {pipeline_mode = #tpu.pipeline_mode<synchronous>, transform_indices = @transform_6, window_bounds = array<i64: 1, 32>}, {pipeline_mode = #tpu.pipeline_mode<synchronous>, transform_indices = @transform_7, window_bounds = array<i64: 1, 32>}, {pipeline_mode = #tpu.pipeline_mode<synchronous>, transform_indices = @transform_8, window_bounds = array<i64: 1, 32>}, {pipeline_mode = #tpu.pipeline_mode<synchronous>, transform_indices = @transform_9, window_bounds = array<i64: 32, 64>}, {pipeline_mode = #tpu.pipeline_mode<synchronous>, transform_indices = @transform_10, window_bounds = array<i64: 1, 64>}, {pipeline_mode = #tpu.pipeline_mode<synchronous>, transform_indices = @transform_11, window_bounds = array<i64: 64, 32>}, {pipeline_mode = #tpu.pipeline_mode<synchronous>, transform_indices = @transform_12, window_bounds = array<i64: 1, 32>}, {pipeline_mode = #tpu.pipeline_mode<synchronous>, transform_indices = @transform_13, window_bounds = array<i64: 1, 32>}, {pipeline_mode = #tpu.pipeline_mode<synchronous>, transform_indices = @transform_14, window_bounds = array<i64: 1, 32>}, {transform_indices = @transform_15, window_bounds = array<i64: 1, 8, 32>}]} {
    %c0 = arith.constant 0 : index
    %c0_0 = arith.constant 0 : index
    %c0_1 = arith.constant 0 : index
    %0 = vector.load %arg1[%c0, %c0_0, %c0_1] : memref<1x8x32xf32, #tpu.memory_space<vmem>>, vector<1x8x32xf32>
    %1 = vector.shape_cast %0 : vector<1x8x32xf32> to vector<8x32xf32>
    %2 = arith.truncf %1 : vector<8x32xf32> to vector<8x32xbf16>
    %c0_2 = arith.constant 0 : index
    %c0_3 = arith.constant 0 : index
    %3 = vector.load %arg2[%c0_2, %c0_3] : memref<32x32xbf16, #tpu.memory_space<vmem>>, vector<32x32xbf16>
    %cst = arith.constant dense<0.000000e+00> : vector<8x32xf32>
    %4 = tpu.matmul %2, %3, %cst {dimension_numbers = #tpu.dot_dimension_numbers<[1], [0], [0], [1], [0, 0, 1, 1], [], []>} : vector<8x32xbf16>, vector<32x32xbf16>, vector<8x32xf32> -> vector<8x32xf32>
    %c0_4 = arith.constant 0 : index
    %c0_5 = arith.constant 0 : index
    %5 = vector.load %arg3[%c0_4, %c0_5] : memref<1x32xf32, #tpu.memory_space<vmem>>, vector<1x32xf32>
    %6 = vector.broadcast %5 : vector<1x32xf32> to vector<8x32xf32>
    %7 = arith.addf %4, %6 : vector<8x32xf32>
    %c0_i32 = arith.constant 0 : i32
    %c2_i32 = arith.constant 2 : i32
    %8 = arith.addi %c0_i32, %c2_i32 : i32
    %c1_i32 = arith.constant 1 : i32
    %9 = scf.for %arg18 = %c0_i32 to %8 step %c1_i32 iter_args(%arg19 = %7) -> (vector<8x32xf32>)  : i32 {
      %13 = arith.truncf %arg19 : vector<8x32xf32> to vector<8x32xbf16>
      %c0_9 = arith.constant 0 : index
      %c0_10 = arith.constant 0 : index
      %14 = vector.load %arg4[%c0_9, %c0_10] : memref<32x96xbf16, #tpu.memory_space<vmem>>, vector<32x96xbf16>
      %cst_11 = arith.constant dense<0.000000e+00> : vector<8x96xf32>
      %15 = tpu.matmul %13, %14, %cst_11 {dimension_numbers = #tpu.dot_dimension_numbers<[1], [0], [0], [1], [0, 0, 1, 1], [], []>} : vector<8x32xbf16>, vector<32x96xbf16>, vector<8x96xf32> -> vector<8x96xf32>
      %c0_12 = arith.constant 0 : index
      %c0_13 = arith.constant 0 : index
      %16 = vector.load %arg5[%c0_12, %c0_13] : memref<1x96xf32, #tpu.memory_space<vmem>>, vector<1x96xf32>
      %17 = vector.broadcast %16 : vector<1x96xf32> to vector<8x96xf32>
      %18 = arith.addf %15, %17 : vector<8x96xf32>
      %19 = arith.truncf %18 : vector<8x96xf32> to vector<8x96xbf16>
      %20 = vector.extract_strided_slice %19 {offsets = [0, 0], sizes = [8, 8], strides = [1, 1]} : vector<8x96xbf16> to vector<8x8xbf16>
      %21 = vector.extract_strided_slice %19 {offsets = [0, 32], sizes = [8, 8], strides = [1, 1]} : vector<8x96xbf16> to vector<8x8xbf16>
      %22 = vector.extract_strided_slice %19 {offsets = [0, 64], sizes = [8, 8], strides = [1, 1]} : vector<8x96xbf16> to vector<8x8xbf16>
      "tpu.trace_start"() <{level = 10 : i32, message = "qd,kd->qk"}> : () -> ()
      %cst_14 = arith.constant dense<0.000000e+00> : vector<8x8xf32>
      %23 = tpu.matmul %20, %21, %cst_14 {dimension_numbers = #tpu.dot_dimension_numbers<[1], [1], [0], [0], [0, 0, 1, 0], [], []>} : vector<8x8xbf16>, vector<8x8xbf16>, vector<8x8xf32> -> vector<8x8xf32>
      "tpu.trace_stop"() : () -> ()
      %cst_15 = arith.constant dense<0xFF800000> : vector<8xf32>
      %24 = vector.multi_reduction <maximumf>, %23, %cst_15 [1] : vector<8x8xf32> to vector<8xf32>
      %25 = vector.shape_cast %24 : vector<8xf32> to vector<8x1xf32>
      %26 = vector.broadcast %25 : vector<8x1xf32> to vector<8x8xf32>
      %27 = arith.subf %23, %26 : vector<8x8xf32>
      %28 = math.exp %27 : vector<8x8xf32>
      %cst_16 = arith.constant dense<0.000000e+00> : vector<8xf32>
      %29 = vector.multi_reduction <add>, %28, %cst_16 [1] : vector<8x8xf32> to vector<8xf32>
      %30 = vector.shape_cast %29 : vector<8xf32> to vector<8x1xf32>
      %31 = tpu.reciprocal %30 {approx = true} : vector<8x1xf32> -> vector<8x1xf32>
      %32 = vector.broadcast %31 : vector<8x1xf32> to vector<8x8xf32>
      %33 = arith.mulf %28, %32 : vector<8x8xf32>
      %34 = arith.truncf %33 : vector<8x8xf32> to vector<8x8xbf16>
      %cst_17 = arith.constant dense<0.000000e+00> : vector<8x8xf32>
      %35 = tpu.matmul %34, %22, %cst_17 {dimension_numbers = #tpu.dot_dimension_numbers<[1], [0], [0], [1], [0, 0, 1, 1], [], []>} : vector<8x8xbf16>, vector<8x8xbf16>, vector<8x8xf32> -> vector<8x8xf32>
      %36 = arith.truncf %35 : vector<8x8xf32> to vector<8x8xbf16>
      %c0_18 = arith.constant 0 : index
      %c0_19 = arith.constant 0 : index
      %37 = vector.load %arg17[%c0_18, %c0_19] : memref<8x32xbf16, #tpu.memory_space<vmem>>, vector<8x8xbf16>
      tpu.vector_store %arg17[%c0_18, %c0_19], %36 {strides = array<i32>} : memref<8x32xbf16, #tpu.memory_space<vmem>>, vector<8x8xbf16>,
      %38 = vector.extract_strided_slice %19 {offsets = [0, 8], sizes = [8, 8], strides = [1, 1]} : vector<8x96xbf16> to vector<8x8xbf16>
      %39 = vector.extract_strided_slice %19 {offsets = [0, 40], sizes = [8, 8], strides = [1, 1]} : vector<8x96xbf16> to vector<8x8xbf16>
      %40 = vector.extract_strided_slice %19 {offsets = [0, 72], sizes = [8, 8], strides = [1, 1]} : vector<8x96xbf16> to vector<8x8xbf16>
      "tpu.trace_start"() <{level = 10 : i32, message = "qd,kd->qk"}> : () -> ()
      %cst_20 = arith.constant dense<0.000000e+00> : vector<8x8xf32>
      %41 = tpu.matmul %38, %39, %cst_20 {dimension_numbers = #tpu.dot_dimension_numbers<[1], [1], [0], [0], [0, 0, 1, 0], [], []>} : vector<8x8xbf16>, vector<8x8xbf16>, vector<8x8xf32> -> vector<8x8xf32>
      "tpu.trace_stop"() : () -> ()
      %cst_21 = arith.constant dense<0xFF800000> : vector<8xf32>
      %42 = vector.multi_reduction <maximumf>, %41, %cst_21 [1] : vector<8x8xf32> to vector<8xf32>
      %43 = vector.shape_cast %42 : vector<8xf32> to vector<8x1xf32>
      %44 = vector.broadcast %43 : vector<8x1xf32> to vector<8x8xf32>
      %45 = arith.subf %41, %44 : vector<8x8xf32>
      %46 = math.exp %45 : vector<8x8xf32>
      %cst_22 = arith.constant dense<0.000000e+00> : vector<8xf32>
      %47 = vector.multi_reduction <add>, %46, %cst_22 [1] : vector<8x8xf32> to vector<8xf32>
      %48 = vector.shape_cast %47 : vector<8xf32> to vector<8x1xf32>
      %49 = tpu.reciprocal %48 {approx = true} : vector<8x1xf32> -> vector<8x1xf32>
      %50 = vector.broadcast %49 : vector<8x1xf32> to vector<8x8xf32>
      %51 = arith.mulf %46, %50 : vector<8x8xf32>
      %52 = arith.truncf %51 : vector<8x8xf32> to vector<8x8xbf16>
      %cst_23 = arith.constant dense<0.000000e+00> : vector<8x8xf32>
      %53 = tpu.matmul %52, %40, %cst_23 {dimension_numbers = #tpu.dot_dimension_numbers<[1], [0], [0], [1], [0, 0, 1, 1], [], []>} : vector<8x8xbf16>, vector<8x8xbf16>, vector<8x8xf32> -> vector<8x8xf32>
      %54 = arith.truncf %53 : vector<8x8xf32> to vector<8x8xbf16>
      %c0_24 = arith.constant 0 : index
      %c8 = arith.constant 8 : index
      %55 = vector.load %arg17[%c0_24, %c8] : memref<8x32xbf16, #tpu.memory_space<vmem>>, vector<8x8xbf16>
      tpu.vector_store %arg17[%c0_24, %c8], %54 {strides = array<i32>} : memref<8x32xbf16, #tpu.memory_space<vmem>>, vector<8x8xbf16>,
      %56 = vector.extract_strided_slice %19 {offsets = [0, 16], sizes = [8, 8], strides = [1, 1]} : vector<8x96xbf16> to vector<8x8xbf16>
      %57 = vector.extract_strided_slice %19 {offsets = [0, 48], sizes = [8, 8], strides = [1, 1]} : vector<8x96xbf16> to vector<8x8xbf16>
      %58 = vector.extract_strided_slice %19 {offsets = [0, 80], sizes = [8, 8], strides = [1, 1]} : vector<8x96xbf16> to vector<8x8xbf16>
      "tpu.trace_start"() <{level = 10 : i32, message = "qd,kd->qk"}> : () -> ()
      %cst_25 = arith.constant dense<0.000000e+00> : vector<8x8xf32>
      %59 = tpu.matmul %56, %57, %cst_25 {dimension_numbers = #tpu.dot_dimension_numbers<[1], [1], [0], [0], [0, 0, 1, 0], [], []>} : vector<8x8xbf16>, vector<8x8xbf16>, vector<8x8xf32> -> vector<8x8xf32>
      "tpu.trace_stop"() : () -> ()
      %cst_26 = arith.constant dense<0xFF800000> : vector<8xf32>
      %60 = vector.multi_reduction <maximumf>, %59, %cst_26 [1] : vector<8x8xf32> to vector<8xf32>
      %61 = vector.shape_cast %60 : vector<8xf32> to vector<8x1xf32>
      %62 = vector.broadcast %61 : vector<8x1xf32> to vector<8x8xf32>
      %63 = arith.subf %59, %62 : vector<8x8xf32>
      %64 = math.exp %63 : vector<8x8xf32>
      %cst_27 = arith.constant dense<0.000000e+00> : vector<8xf32>
      %65 = vector.multi_reduction <add>, %64, %cst_27 [1] : vector<8x8xf32> to vector<8xf32>
      %66 = vector.shape_cast %65 : vector<8xf32> to vector<8x1xf32>
      %67 = tpu.reciprocal %66 {approx = true} : vector<8x1xf32> -> vector<8x1xf32>
      %68 = vector.broadcast %67 : vector<8x1xf32> to vector<8x8xf32>
      %69 = arith.mulf %64, %68 : vector<8x8xf32>
      %70 = arith.truncf %69 : vector<8x8xf32> to vector<8x8xbf16>
      %cst_28 = arith.constant dense<0.000000e+00> : vector<8x8xf32>
      %71 = tpu.matmul %70, %58, %cst_28 {dimension_numbers = #tpu.dot_dimension_numbers<[1], [0], [0], [1], [0, 0, 1, 1], [], []>} : vector<8x8xbf16>, vector<8x8xbf16>, vector<8x8xf32> -> vector<8x8xf32>
      %72 = arith.truncf %71 : vector<8x8xf32> to vector<8x8xbf16>
      %c0_29 = arith.constant 0 : index
      %c16 = arith.constant 16 : index
      %73 = vector.load %arg17[%c0_29, %c16] : memref<8x32xbf16, #tpu.memory_space<vmem>>, vector<8x8xbf16>
      tpu.vector_store %arg17[%c0_29, %c16], %72 {strides = array<i32>} : memref<8x32xbf16, #tpu.memory_space<vmem>>, vector<8x8xbf16>,
      %74 = vector.extract_strided_slice %19 {offsets = [0, 24], sizes = [8, 8], strides = [1, 1]} : vector<8x96xbf16> to vector<8x8xbf16>
      %75 = vector.extract_strided_slice %19 {offsets = [0, 56], sizes = [8, 8], strides = [1, 1]} : vector<8x96xbf16> to vector<8x8xbf16>
      %76 = vector.extract_strided_slice %19 {offsets = [0, 88], sizes = [8, 8], strides = [1, 1]} : vector<8x96xbf16> to vector<8x8xbf16>
      "tpu.trace_start"() <{level = 10 : i32, message = "qd,kd->qk"}> : () -> ()
      %cst_30 = arith.constant dense<0.000000e+00> : vector<8x8xf32>
      %77 = tpu.matmul %74, %75, %cst_30 {dimension_numbers = #tpu.dot_dimension_numbers<[1], [1], [0], [0], [0, 0, 1, 0], [], []>} : vector<8x8xbf16>, vector<8x8xbf16>, vector<8x8xf32> -> vector<8x8xf32>
      "tpu.trace_stop"() : () -> ()
      %cst_31 = arith.constant dense<0xFF800000> : vector<8xf32>
      %78 = vector.multi_reduction <maximumf>, %77, %cst_31 [1] : vector<8x8xf32> to vector<8xf32>
      %79 = vector.shape_cast %78 : vector<8xf32> to vector<8x1xf32>
      %80 = vector.broadcast %79 : vector<8x1xf32> to vector<8x8xf32>
      %81 = arith.subf %77, %80 : vector<8x8xf32>
      %82 = math.exp %81 : vector<8x8xf32>
      %cst_32 = arith.constant dense<0.000000e+00> : vector<8xf32>
      %83 = vector.multi_reduction <add>, %82, %cst_32 [1] : vector<8x8xf32> to vector<8xf32>
      %84 = vector.shape_cast %83 : vector<8xf32> to vector<8x1xf32>
      %85 = tpu.reciprocal %84 {approx = true} : vector<8x1xf32> -> vector<8x1xf32>
      %86 = vector.broadcast %85 : vector<8x1xf32> to vector<8x8xf32>
      %87 = arith.mulf %82, %86 : vector<8x8xf32>
      %88 = arith.truncf %87 : vector<8x8xf32> to vector<8x8xbf16>
      %cst_33 = arith.constant dense<0.000000e+00> : vector<8x8xf32>
      %89 = tpu.matmul %88, %76, %cst_33 {dimension_numbers = #tpu.dot_dimension_numbers<[1], [0], [0], [1], [0, 0, 1, 1], [], []>} : vector<8x8xbf16>, vector<8x8xbf16>, vector<8x8xf32> -> vector<8x8xf32>
      %90 = arith.truncf %89 : vector<8x8xf32> to vector<8x8xbf16>
      %c0_34 = arith.constant 0 : index
      %c24 = arith.constant 24 : index
      %91 = vector.load %arg17[%c0_34, %c24] : memref<8x32xbf16, #tpu.memory_space<vmem>>, vector<8x8xbf16>
      tpu.vector_store %arg17[%c0_34, %c24], %90 {strides = array<i32>} : memref<8x32xbf16, #tpu.memory_space<vmem>>, vector<8x8xbf16>,
      %c0_35 = arith.constant 0 : index
      %c0_36 = arith.constant 0 : index
      %92 = vector.load %arg17[%c0_35, %c0_36] : memref<8x32xbf16, #tpu.memory_space<vmem>>, vector<8x32xbf16>
      %c0_37 = arith.constant 0 : index
      %c0_38 = arith.constant 0 : index
      %93 = vector.load %arg6[%c0_37, %c0_38] : memref<32x32xbf16, #tpu.memory_space<vmem>>, vector<32x32xbf16>
      %cst_39 = arith.constant dense<0.000000e+00> : vector<8x32xf32>
      %94 = tpu.matmul %92, %93, %cst_39 {dimension_numbers = #tpu.dot_dimension_numbers<[1], [0], [0], [1], [0, 0, 1, 1], [], []>} : vector<8x32xbf16>, vector<32x32xbf16>, vector<8x32xf32> -> vector<8x32xf32>
      %c0_40 = arith.constant 0 : index
      %c0_41 = arith.constant 0 : index
      %95 = vector.load %arg7[%c0_40, %c0_41] : memref<1x32xf32, #tpu.memory_space<vmem>>, vector<1x32xf32>
      %96 = vector.broadcast %95 : vector<1x32xf32> to vector<8x32xf32>
      %97 = arith.addf %94, %96 : vector<8x32xf32>
      %98 = arith.addf %arg19, %97 : vector<8x32xf32>
      %c0_42 = arith.constant 0 : index
      %c0_43 = arith.constant 0 : index
      %99 = vector.load %arg8[%c0_42, %c0_43] : memref<1x32xf32, #tpu.memory_space<vmem>>, vector<1x32xf32>
      %c0_44 = arith.constant 0 : index
      %c0_45 = arith.constant 0 : index
      %100 = vector.load %arg9[%c0_44, %c0_45] : memref<1x32xf32, #tpu.memory_space<vmem>>, vector<1x32xf32>
      %cst_46 = arith.constant dense<0.000000e+00> : vector<8xf32>
      %101 = vector.multi_reduction <add>, %98, %cst_46 [1] : vector<8x32xf32> to vector<8xf32>
      %102 = vector.shape_cast %101 : vector<8xf32> to vector<8x1xf32>
      %cst_47 = arith.constant 3.200000e+01 : f32
      %103 = vector.broadcast %cst_47 : f32 to vector<8x1xf32>
      %104 = arith.divf %102, %103 : vector<8x1xf32>
      %105 = vector.broadcast %104 : vector<8x1xf32> to vector<8x32xf32>
      %106 = arith.subf %98, %105 : vector<8x32xf32>
      %107 = arith.mulf %106, %106 : vector<8x32xf32>
      %cst_48 = arith.constant dense<0.000000e+00> : vector<8xf32>
      %108 = vector.multi_reduction <add>, %107, %cst_48 [1] : vector<8x32xf32> to vector<8xf32>
      %109 = vector.shape_cast %108 : vector<8xf32> to vector<8x1xf32>
      %cst_49 = arith.constant 3.200000e+01 : f32
      %110 = vector.broadcast %cst_49 : f32 to vector<8x1xf32>
      %111 = arith.divf %109, %110 : vector<8x1xf32>
      %112 = vector.broadcast %104 : vector<8x1xf32> to vector<8x32xf32>
      %113 = arith.subf %98, %112 : vector<8x32xf32>
      %cst_50 = arith.constant 9.99999996E-13 : f32
      %114 = vector.broadcast %cst_50 : f32 to vector<8x1xf32>
      %115 = arith.addf %111, %114 : vector<8x1xf32>
      %116 = math.rsqrt %115 : vector<8x1xf32>
      %117 = vector.broadcast %116 : vector<8x1xf32> to vector<8x32xf32>
      %118 = arith.mulf %113, %117 : vector<8x32xf32>
      %119 = vector.broadcast %99 : vector<1x32xf32> to vector<8x32xf32>
      %120 = arith.mulf %118, %119 : vector<8x32xf32>
      %121 = vector.broadcast %100 : vector<1x32xf32> to vector<8x32xf32>
      %122 = arith.addf %120, %121 : vector<8x32xf32>
      %123 = arith.truncf %122 : vector<8x32xf32> to vector<8x32xbf16>
      %cst_51 = arith.constant 0.000000e+00 : f32
      %124 = vector.broadcast %cst_51 : f32 to vector<8x32xf32>
      %c0_52 = arith.constant 0 : index
      %c0_53 = arith.constant 0 : index
      %125 = vector.load %arg10[%c0_52, %c0_53] : memref<32x64xbf16, #tpu.memory_space<vmem>>, vector<32x64xbf16>
      %cst_54 = arith.constant dense<0.000000e+00> : vector<8x64xf32>
      %126 = tpu.matmul %123, %125, %cst_54 {dimension_numbers = #tpu.dot_dimension_numbers<[1], [0], [0], [1], [0, 0, 1, 1], [], []>} : vector<8x32xbf16>, vector<32x64xbf16>, vector<8x64xf32> -> vector<8x64xf32>
      %c0_55 = arith.constant 0 : index
      %c0_56 = arith.constant 0 : index
      %127 = vector.load %arg11[%c0_55, %c0_56] : memref<1x64xf32, #tpu.memory_space<vmem>>, vector<1x64xf32>
      %128 = vector.broadcast %127 : vector<1x64xf32> to vector<8x64xf32>
      %129 = arith.addf %126, %128 : vector<8x64xf32>
      %cst_57 = arith.constant 5.000000e-01 : f32
      %130 = vector.broadcast %cst_57 : f32 to vector<8x64xf32>
      %131 = arith.mulf %130, %129 : vector<8x64xf32>
      %cst_58 = arith.constant 4.471500e-02 : f32
      %132 = vector.broadcast %cst_58 : f32 to vector<8x64xf32>
      %133 = arith.mulf %132, %129 : vector<8x64xf32>
      %134 = arith.mulf %133, %129 : vector<8x64xf32>
      %135 = arith.mulf %134, %129 : vector<8x64xf32>
      %136 = arith.addf %129, %135 : vector<8x64xf32>
      %cst_59 = arith.constant 0.797884583 : f32
      %137 = vector.broadcast %cst_59 : f32 to vector<8x64xf32>
      %138 = arith.mulf %137, %136 : vector<8x64xf32>
      %139 = math.tanh %138 : vector<8x64xf32>
      %cst_60 = arith.constant 1.000000e+00 : f32
      %140 = vector.broadcast %cst_60 : f32 to vector<8x64xf32>
      %141 = arith.addf %140, %139 : vector<8x64xf32>
      %142 = arith.mulf %131, %141 : vector<8x64xf32>
      %143 = arith.truncf %142 : vector<8x64xf32> to vector<8x64xbf16>
      %c0_61 = arith.constant 0 : index
      %c0_62 = arith.constant 0 : index
      %144 = vector.load %arg12[%c0_61, %c0_62] : memref<64x32xbf16, #tpu.memory_space<vmem>>, vector<64x32xbf16>
      %cst_63 = arith.constant dense<0.000000e+00> : vector<8x32xf32>
      %145 = tpu.matmul %143, %144, %cst_63 {dimension_numbers = #tpu.dot_dimension_numbers<[1], [0], [0], [1], [0, 0, 1, 1], [], []>} : vector<8x64xbf16>, vector<64x32xbf16>, vector<8x32xf32> -> vector<8x32xf32>
      %146 = arith.addf %124, %145 : vector<8x32xf32>
      %c0_64 = arith.constant 0 : index
      %c0_65 = arith.constant 0 : index
      %147 = vector.load %arg13[%c0_64, %c0_65] : memref<1x32xf32, #tpu.memory_space<vmem>>, vector<1x32xf32>
      %148 = vector.broadcast %147 : vector<1x32xf32> to vector<8x32xf32>
      %149 = arith.addf %146, %148 : vector<8x32xf32>
      %150 = arith.addf %149, %122 : vector<8x32xf32>
      %c0_66 = arith.constant 0 : index
      %c0_67 = arith.constant 0 : index
      %151 = vector.load %arg14[%c0_66, %c0_67] : memref<1x32xf32, #tpu.memory_space<vmem>>, vector<1x32xf32>
      %c0_68 = arith.constant 0 : index
      %c0_69 = arith.constant 0 : index
      %152 = vector.load %arg15[%c0_68, %c0_69] : memref<1x32xf32, #tpu.memory_space<vmem>>, vector<1x32xf32>
      %cst_70 = arith.constant dense<0.000000e+00> : vector<8xf32>
      %153 = vector.multi_reduction <add>, %150, %cst_70 [1] : vector<8x32xf32> to vector<8xf32>
      %154 = vector.shape_cast %153 : vector<8xf32> to vector<8x1xf32>
      %cst_71 = arith.constant 3.200000e+01 : f32
      %155 = vector.broadcast %cst_71 : f32 to vector<8x1xf32>
      %156 = arith.divf %154, %155 : vector<8x1xf32>
      %157 = vector.broadcast %156 : vector<8x1xf32> to vector<8x32xf32>
      %158 = arith.subf %150, %157 : vector<8x32xf32>
      %159 = arith.mulf %158, %158 : vector<8x32xf32>
      %cst_72 = arith.constant dense<0.000000e+00> : vector<8xf32>
      %160 = vector.multi_reduction <add>, %159, %cst_72 [1] : vector<8x32xf32> to vector<8xf32>
      %161 = vector.shape_cast %160 : vector<8xf32> to vector<8x1xf32>
      %cst_73 = arith.constant 3.200000e+01 : f32
      %162 = vector.broadcast %cst_73 : f32 to vector<8x1xf32>
      %163 = arith.divf %161, %162 : vector<8x1xf32>
      %164 = vector.broadcast %156 : vector<8x1xf32> to vector<8x32xf32>
      %165 = arith.subf %150, %164 : vector<8x32xf32>
      %cst_74 = arith.constant 9.99999996E-13 : f32
      %166 = vector.broadcast %cst_74 : f32 to vector<8x1xf32>
      %167 = arith.addf %163, %166 : vector<8x1xf32>
      %168 = math.rsqrt %167 : vector<8x1xf32>
      %169 = vector.broadcast %168 : vector<8x1xf32> to vector<8x32xf32>
      %170 = arith.mulf %165, %169 : vector<8x32xf32>
      %171 = vector.broadcast %151 : vector<1x32xf32> to vector<8x32xf32>
      %172 = arith.mulf %170, %171 : vector<8x32xf32>
      %173 = vector.broadcast %152 : vector<1x32xf32> to vector<8x32xf32>
      %174 = arith.addf %172, %173 : vector<8x32xf32>
      scf.yield %174 : vector<8x32xf32>
    }
    %c0_6 = arith.constant 0 : index
    %c0_7 = arith.constant 0 : index
    %c0_8 = arith.constant 0 : index
    %10 = vector.load %arg16[%c0_6, %c0_7, %c0_8] : memref<1x8x32xf32, #tpu.memory_space<vmem>>, vector<1x8x32xf32>
    %11 = vector.shape_cast %10 : vector<1x8x32xf32> to vector<8x32xf32>
    %12 = vector.shape_cast %9 : vector<8x32xf32> to vector<1x8x32xf32>
    tpu.vector_store %arg16[%c0_6, %c0_7, %c0_8], %12 {strides = array<i32>} : memref<1x8x32xf32, #tpu.memory_space<vmem>>, vector<1x8x32xf32>,
    return
  }
  func.func @transform_0(%arg0: i32) -> (i32, i32, i32) {
    %c0_i32 = arith.constant 0 : i32
    %c0_i32_0 = arith.constant 0 : i32
    %c0_i32_1 = arith.constant 0 : i32
    return %arg0, %c0_i32, %c0_i32_0 : i32, i32, i32
  }
  func.func @transform_1(%arg0: i32) -> (i32, i32) {
    %c0_i32 = arith.constant 0 : i32
    %c0_i32_0 = arith.constant 0 : i32
    %c0_i32_1 = arith.constant 0 : i32
    return %c0_i32, %c0_i32_0 : i32, i32
  }
  func.func @transform_2(%arg0: i32) -> (i32, i32) {
    %c0_i32 = arith.constant 0 : i32
    %c0_i32_0 = arith.constant 0 : i32
    %c0_i32_1 = arith.constant 0 : i32
    return %c0_i32, %c0_i32_0 : i32, i32
  }
  func.func @transform_3(%arg0: i32) -> (i32, i32) {
    %c0_i32 = arith.constant 0 : i32
    %c0_i32_0 = arith.constant 0 : i32
    %c0_i32_1 = arith.constant 0 : i32
    return %c0_i32, %c0_i32_0 : i32, i32
  }
  func.func @transform_4(%arg0: i32) -> (i32, i32) {
    %c0_i32 = arith.constant 0 : i32
    %c0_i32_0 = arith.constant 0 : i32
    %c0_i32_1 = arith.constant 0 : i32
    return %c0_i32, %c0_i32_0 : i32, i32
  }
  func.func @transform_5(%arg0: i32) -> (i32, i32) {
    %c0_i32 = arith.constant 0 : i32
    %c0_i32_0 = arith.constant 0 : i32
    %c0_i32_1 = arith.constant 0 : i32
    return %c0_i32, %c0_i32_0 : i32, i32
  }
  func.func @transform_6(%arg0: i32) -> (i32, i32) {
    %c0_i32 = arith.constant 0 : i32
    %c0_i32_0 = arith.constant 0 : i32
    %c0_i32_1 = arith.constant 0 : i32
    return %c0_i32, %c0_i32_0 : i32, i32
  }
  func.func @transform_7(%arg0: i32) -> (i32, i32) {
    %c0_i32 = arith.constant 0 : i32
    %c0_i32_0 = arith.constant 0 : i32
    %c0_i32_1 = arith.constant 0 : i32
    return %c0_i32, %c0_i32_0 : i32, i32
  }
  func.func @transform_8(%arg0: i32) -> (i32, i32) {
    %c0_i32 = arith.constant 0 : i32
    %c0_i32_0 = arith.constant 0 : i32
    %c0_i32_1 = arith.constant 0 : i32
    return %c0_i32, %c0_i32_0 : i32, i32
  }
  func.func @transform_9(%arg0: i32) -> (i32, i32) {
    %c0_i32 = arith.constant 0 : i32
    %c0_i32_0 = arith.constant 0 : i32
    %c0_i32_1 = arith.constant 0 : i32
    return %c0_i32, %c0_i32_0 : i32, i32
  }
  func.func @transform_10(%arg0: i32) -> (i32, i32) {
    %c0_i32 = arith.constant 0 : i32
    %c0_i32_0 = arith.constant 0 : i32
    %c0_i32_1 = arith.constant 0 : i32
    return %c0_i32, %c0_i32_0 : i32, i32
  }
  func.func @transform_11(%arg0: i32) -> (i32, i32) {
    %c0_i32 = arith.constant 0 : i32
    %c0_i32_0 = arith.constant 0 : i32
    %c0_i32_1 = arith.constant 0 : i32
    return %c0_i32, %c0_i32_0 : i32, i32
  }
  func.func @transform_12(%arg0: i32) -> (i32, i32) {
    %c0_i32 = arith.constant 0 : i32
    %c0_i32_0 = arith.constant 0 : i32
    %c0_i32_1 = arith.constant 0 : i32
    return %c0_i32, %c0_i32_0 : i32, i32
  }
  func.func @transform_13(%arg0: i32) -> (i32, i32) {
    %c0_i32 = arith.constant 0 : i32
    %c0_i32_0 = arith.constant 0 : i32
    %c0_i32_1 = arith.constant 0 : i32
    return %c0_i32, %c0_i32_0 : i32, i32
  }
  func.func @transform_14(%arg0: i32) -> (i32, i32) {
    %c0_i32 = arith.constant 0 : i32
    %c0_i32_0 = arith.constant 0 : i32
    %c0_i32_1 = arith.constant 0 : i32
    return %c0_i32, %c0_i32_0 : i32, i32
  }
  func.func @transform_15(%arg0: i32) -> (i32, i32, i32) {
    %c0_i32 = arith.constant 0 : i32
    %c0_i32_0 = arith.constant 0 : i32
    %c0_i32_1 = arith.constant 0 : i32
    return %arg0, %c0_i32, %c0_i32_0 : i32, i32, i32
  }
}

</mosaic_0001>

<bundles_post_ra>
// kernel: tpu_custom_call.1
= control target key start
LH: loop header
LB: loop body
LE: loop exit
PB: predicated region body
PF: predicated region fallthrough
CT: control target
= control target key end

     0   :  { %s3541_s0 = inlined_call_operand.hbm [shape: f32[2,8,32], index: 0, kind: input, shape index: {}]   ;;  %s3542_s1 = inlined_call_operand.hbm [shape: bf16[32,32], index: 1, kind: input, shape index: {}]   ;;  %s3543_s2 = inlined_call_operand.hbm [shape: f32[1,32], index: 2, kind: input, shape index: {}]   ;;  %s3544_s3 = inlined_call_operand.hbm [shape: bf16[32,96], index: 3, kind: input, shape index: {}]   ;;  %s3545_s4 = inlined_call_operand.hbm [shape: f32[1,96], index: 4, kind: input, shape index: {}]   ;;  %s3546_s5 = inlined_call_operand.hbm [shape: bf16[32,32], index: 5, kind: input, shape index: {}]   ;;  %s3547_s6 = inlined_call_operand.hbm [shape: f32[1,32], index: 6, kind: input, shape index: {}]   ;;  %s3548_s7 = inlined_call_operand.hbm [shape: f32[1,32], index: 7, kind: input, shape index: {}]   ;;  %s3549_s8 = inlined_call_operand.hbm [shape: f32[1,32], index: 8, kind: input, shape index: {}]   ;;  %s3550_s9 = inlined_call_operand.hbm [shape: bf16[32,64], index: 9, kind: input, shape index: {}]   ;;  %s3551_s10 = inlined_call_operand.hbm [shape: f32[1,64], index: 10, kind: input, shape index: {}]   ;;  %s3552_s11 = inlined_call_operand.hbm [shape: bf16[64,32], index: 11, kind: input, shape index: {}]   ;;  %s3553_s12 = inlined_call_operand.hbm [shape: f32[1,32], index: 12, kind: input, shape index: {}]   ;;  %s3554_s13 = inlined_call_operand.hbm [shape: f32[1,32], index: 13, kind: input, shape index: {}]   ;;  %s3555_s14 = inlined_call_operand.hbm [shape: f32[1,32], index: 14, kind: input, shape index: {}]   ;;  %s3556_s15 = inlined_call_operand.hbm [shape: f32[2,8,32], index: 15, kind: output, shape index: {}]  }
   0x1   :  { %3568 = sst [smem:[#allocation42_spill]] %s3541_s0 }
   0x2   :  { %3569 = sst [smem:[#allocation43_spill]] %s3542_s1 }
   0x3   :  { %3570 = sst [smem:[#allocation44_spill]] %s3543_s2 }
   0x4   :  { %3571 = sst [smem:[#allocation45_spill]] %s3544_s3 }
   0x5   :  { %3572 = sst [smem:[#allocation46_spill]] %s3556_s15 }
   0x6   :  { %20 = vsyncpa [#allocation4], 0 }
   0x7   :  { %22 = vsyncpa [#allocation4 + $0x1], 0 }
   0x8   :  { %23 = vsyncpa [#allocation7], 0 }
   0x9   :  { %24 = vsyncpa [#allocation10], 0 }
   0xa   :  { %25 = vsyncpa [#allocation13], 0 }
   0xb   :  { %26 = vsyncpa [#allocation16], 0 }
   0xc   :  { %27 = vsyncpa [#allocation19], 0 }
   0xd   :  { %28 = vsyncpa [#allocation22], 0 }
   0xe   :  { %29 = vsyncpa [#allocation25], 0 }
   0xf   :  { %30 = vsyncpa [#allocation5], 0 }
  0x10   :  { %32 = vsyncpa [#allocation5 + $0x1], 0  ;;  %s2937_s18 = smov 0   ;;  %s2939_s19 = smov 0  }
  0x11   :  { %s2941_s20 = smov 0   ;;  %s2943_s21 = smov 0  }
  0x12 LB: > { %3573 = sst [smem:[#allocation37_spill]] %s2799_s18  ;;  %s2821_s22 = smov [#allocation6]   ;;  %s2811_s21 = sphi %s2943_s21, %s3623_s21   ;;  %s2807_s20 = sphi %s2941_s20, %s3622_s20   ;;  %s2803_s19 = sphi %s2939_s19, %s3621_s19   ;;  %s2799_s18 = sphi %s2937_s18, %s3620_s18  }
  0x13   : > { %3574 = sst [smem:[#allocation38_spill]] %s2803_s19  ;;  %s401_s23 = sshll.u32 %s2821_s22, 4  ;;  %s2963_s23 = int_to_ptr.vmem [resolvable:$true] %s401_s23 }
  0x14   : > { %3575 = sst [smem:[#allocation39_spill]] %s2807_s20  ;;  %s2958_s24 = sadd.s32 4294967295, %s2811_s21  }
  0x15   : > { %3576 = sst [smem:[#allocation40_spill]] %s2958_s24  ;;  %p1826_p0 = scmp.ge.s32.totalorder %s2811_s21, 1 }
  0x16   : > { %p3565_p1 = scmp.eq.s32.totalorder %s2958_s24, 0  ;;  %p389_p2 = scmp.lt.s32.totalorder %s2811_s21, 3 }
  0x17   : > { %s2822_s26 = smov [#allocation9]   ;;  %s2823_s29 = smov [#allocation12]  }
  0x18   : > { %p2965_p3 = pnand %p1826_p0, %p389_p2  ;;  %s425_s27 = sshll.u32 %s2822_s26, 4  ;;  %s2978_s27 = int_to_ptr.vmem [resolvable:$true] %s425_s27 }
  0x19   : > { %s449_s30 = sshll.u32 %s2823_s29, 4  ;;  %s3580_s1 = sld [smem:[#allocation43_spill]]  ;;  %s2980_s30 = int_to_ptr.vmem [resolvable:$true] %s449_s30 }
  0x1a   : > { %s3577_s25 = scalar_select %p2965_p3, 1, 0 }
  0x1b   : > { %p2090_p5 = pneg %p2965_p3 }
  0x1c   : > { %3578 = sst [smem:[#allocation41_spill]] %s3577_s25 }
  0x1d   : > { %p2974_p6 = pnand %p2090_p5, %p3565_p1 }
  0x1f   : > { %s2287_s22 = scalar_lea.hbm %s3580_s1, 256  ;;  %p2990_p8 = pneg %p2974_p6 }
  0x20   : > { %p2288_p7 = scmp.ne.s32.totalorder %s3580_s1, %s2287_s22  ;;  %p2294_p11 = scmp.lt.u32.totalorder %s2287_s22, %s3580_s1 }
  0x22   : > { %p2290_p9 = pnand %p2990_p8, %p2288_p7 }
  0x24   : > { %p2291_p10 = pneg %p2290_p9 }
  0x26   : > { %p2296_p12 = pnand %p2294_p11, %p2291_p10 }
  0x28   : > { %2299 = shalt.err (!%p2296_p12)
}
  0x29   : > { %s2300_s15 = scalar_lea.vmem %s2963_s23, 256  ;;  %p2308_p5 = scmp.lt.s32.totalorder %s2963_s23, %s2963_s23 }
  0x2a   : > { %p2301_p13 = scmp.ne.s32.totalorder %s2963_s23, %s2300_s15  ;;  %p2309_p4 = scmp.lt.s32.totalorder %s2300_s15, %s2300_s15 }
  0x2c   : > { %p2303_p0 = pnand %p2301_p13, %p2990_p8  ;;  %p2310_p7 = por %p2309_p4, %p2308_p5 }
  0x2e   : > { %p2304_p2 = pneg %p2303_p0 }
  0x30   : > { %p2311_p9 = pnand %p2310_p7, %p2304_p2 }
  0x32   : > { %2314 = shalt.err (!%p2311_p9)
}
  0x33   : > { %s2824_s25 = smov 64   ;;  %s2825_s0 = smov 4  }
  0x34   : > { %2093 = dma.hbm_to_vmem [thread:$0]  (!%p2974_p6), %s3580_s1, 256, %s2963_s23, [#allocation7], %s2824_s25, %s2824_s25, %s2825_s0  }
  0x35   : > { %s3582_s3 = sld [smem:[#allocation45_spill]] }
  0x3b   : > { %s2315_s15 = scalar_lea.hbm %s3582_s3, 256 }
  0x3c   : > { %p2316_p4 = scmp.ne.s32.totalorder %s3582_s3, %s2315_s15  ;;  %p2322_p12 = scmp.lt.u32.totalorder %s2315_s15, %s3582_s3 }
  0x3e   : > { %p2318_p10 = pnand %p2316_p4, %p2990_p8 }
  0x40   : > { %p2319_p11 = pneg %p2318_p10 }
  0x42   : > { %p2324_p13 = pnand %p2322_p12, %p2319_p11 }
  0x44   : > { %2327 = shalt.err (!%p2324_p13)
}
  0x45   : > { %s2328_s23 = scalar_lea.vmem %s2978_s27, 256  ;;  %p2336_p7 = scmp.lt.s32.totalorder %s2978_s27, %s2978_s27 }
  0x46   : > { %p2329_p0 = scmp.ne.s32.totalorder %s2978_s27, %s2328_s23  ;;  %p2337_p9 = scmp.lt.s32.totalorder %s2328_s23, %s2328_s23 }
  0x48   : > { %p2331_p2 = pnand %p2329_p0, %p2990_p8  ;;  %p2338_p4 = por %p2337_p9, %p2336_p7 }
  0x4a   : > { %p2332_p5 = pneg %p2331_p2 }
  0x4c   : > { %p2339_p10 = pnand %p2338_p4, %p2332_p5 }
  0x4e   : > { %2342 = shalt.err (!%p2339_p10)
}
  0x4f   : > { %2099 = dma.hbm_to_vmem [thread:$0]  (!%p2974_p6), %s3582_s3, 256, %s2978_s27, [#allocation10], %s2824_s25, %s2824_s25, %s2825_s0  }
  0x50   : > { %s2343_s16 = scalar_lea.hbm %s3546_s5, 256 }
  0x51   : > { %p2344_p11 = scmp.ne.s32.totalorder %s3546_s5, %s2343_s16  ;;  %p2350_p0 = scmp.lt.u32.totalorder %s2343_s16, %s3546_s5 }
  0x53   : > { %p2346_p12 = pnand %p2344_p11, %p2990_p8 }
  0x55   : > { %p2347_p13 = pneg %p2346_p12 }
  0x57   : > { %p2352_p2 = pnand %p2350_p0, %p2347_p13 }
  0x59   : > { %2355 = shalt.err (!%p2352_p2)
}
  0x5a   : > { %s2356_s27 = scalar_lea.vmem %s2980_s30, 256  ;;  %p2364_p4 = scmp.lt.s32.totalorder %s2980_s30, %s2980_s30 }
  0x5b   : > { %p2357_p5 = scmp.ne.s32.totalorder %s2980_s30, %s2356_s27  ;;  %p2365_p10 = scmp.lt.s32.totalorder %s2356_s27, %s2356_s27 }
  0x5d   : > { %p2359_p7 = pnand %p2357_p5, %p2990_p8  ;;  %p2366_p11 = por %p2365_p10, %p2364_p4 }
  0x5f   : > { %p2360_p9 = pneg %p2359_p7 }
  0x61   : > { %p2367_p12 = pnand %p2366_p11, %p2360_p9 }
  0x63   : > { %2370 = shalt.err (!%p2367_p12)
}
  0x64   : > { %2105 = dma.hbm_to_vmem [thread:$0]  (!%p2974_p6), %s3546_s5, 256, %s2980_s30, [#allocation13], %s2824_s25, %s2824_s25, %s2825_s0  }
  0x65   : > { %s2826_s19 = smov [#allocation15]   ;;  %s2827_s24 = smov [#allocation18]  }
  0x66   : > { %s474_s20 = sshll.u32 %s2826_s19, 4  ;;  %s495_s16 = sshll.u32 %s2827_s24, 4  ;;  %s475_s20 = int_to_ptr.vmem [resolvable:$true] %s474_s20  ;;  %s496_s16 = int_to_ptr.vmem [resolvable:$true] %s495_s16 }
  0x67   : > { %s2371_s29 = scalar_lea.hbm %s3548_s7, 16 }
  0x68   : > { %p2372_p13 = scmp.ne.s32.totalorder %s3548_s7, %s2371_s29  ;;  %p2378_p5 = scmp.lt.u32.totalorder %s2371_s29, %s3548_s7 }
  0x6a   : > { %p2374_p0 = pnand %p2372_p13, %p2990_p8 }
  0x6c   : > { %p2375_p2 = pneg %p2374_p0 }
  0x6e   : > { %p2380_p7 = pnand %p2378_p5, %p2375_p2 }
  0x70   : > { %2383 = shalt.err (!%p2380_p7)
}
  0x71   : > { %s2384_s30 = scalar_lea.vmem %s475_s20, 16  ;;  %s2391_s18 = scalar_lea.vmem %s475_s20, 32 }
  0x72   : > { %p2385_p9 = scmp.ne.s32.totalorder %s475_s20, %s2384_s30  ;;  %p2392_p11 = scmp.lt.s32.totalorder %s475_s20, %s475_s20 }
  0x73   : > { %p2393_p12 = scmp.lt.s32.totalorder %s2391_s18, %s2384_s30 }
  0x74   : > { %p2387_p4 = pnand %p2385_p9, %p2990_p8 }
  0x75   : > { %p2394_p1 = por %p2393_p12, %p2392_p11 }
  0x76   : > { %p2388_p10 = pneg %p2387_p4 }
  0x78   : > { %p2395_p3 = pnand %p2394_p1, %p2388_p10 }
  0x7a   : > { %2398 = shalt.err (!%p2395_p3)
}
  0x7b   : > { %2111 = dma.hbm_to_vmem [thread:$0]  (!%p2974_p6), %s3548_s7, 16, %s475_s20, [#allocation16]  }
  0x7c   : > { %s2399_s22 = scalar_lea.hbm %s3550_s9, 256 }
  0x7d   : > { %p2400_p13 = scmp.ne.s32.totalorder %s3550_s9, %s2399_s22  ;;  %p2406_p3 = scmp.lt.u32.totalorder %s2399_s22, %s3550_s9 }
  0x7f   : > { %p2402_p0 = pnand %p2400_p13, %p2990_p8 }
  0x81   : > { %p2403_p1 = pneg %p2402_p0 }
  0x83   : > { %p2408_p2 = pnand %p2406_p3, %p2403_p1 }
  0x85   : > { %2411 = shalt.err (!%p2408_p2)
}
  0x86   : > { %s2412_s30 = scalar_lea.vmem %s496_s16, 256  ;;  %p2420_p4 = scmp.lt.s32.totalorder %s496_s16, %s496_s16 }
  0x87   : > { %p2413_p5 = scmp.ne.s32.totalorder %s496_s16, %s2412_s30  ;;  %p2421_p10 = scmp.lt.s32.totalorder %s2412_s30, %s2412_s30 }
  0x89   : > { %p2415_p7 = pnand %p2413_p5, %p2990_p8  ;;  %p2422_p11 = por %p2421_p10, %p2420_p4 }
  0x8b   : > { %p2416_p9 = pneg %p2415_p7 }
  0x8d   : > { %p2423_p12 = pnand %p2422_p11, %p2416_p9 }
  0x8f   : > { %2426 = shalt.err (!%p2423_p12)
}
  0x90   : > { %2117 = dma.hbm_to_vmem [thread:$0]  (!%p2974_p6), %s3550_s9, 256, %s496_s16, [#allocation19], %s2824_s25, %s2824_s25, %s2825_s0  }
  0x91   : > { %s2828_s19 = smov [#allocation21]   ;;  %s2829_s1 = smov [#allocation24]  }
  0x92   : > { %s519_s24 = sshll.u32 %s2828_s19, 4  ;;  %s544_s17 = sshll.u32 %s2829_s1, 4  ;;  %s520_s24 = int_to_ptr.vmem [resolvable:$true] %s519_s24  ;;  %s545_s17 = int_to_ptr.vmem [resolvable:$true] %s544_s17 }
  0x93   : > { %s2427_s15 = scalar_lea.hbm %s3552_s11, 512 }
  0x94   : > { %p2428_p13 = scmp.ne.s32.totalorder %s3552_s11, %s2427_s15  ;;  %p2434_p3 = scmp.lt.u32.totalorder %s2427_s15, %s3552_s11 }
  0x96   : > { %p2430_p0 = pnand %p2428_p13, %p2990_p8 }
  0x98   : > { %p2431_p1 = pneg %p2430_p0 }
  0x9a   : > { %p2436_p2 = pnand %p2434_p3, %p2431_p1 }
  0x9c   : > { %2439 = shalt.err (!%p2436_p2)
}
  0x9d   : > { %s2440_s16 = scalar_lea.vmem %s520_s24, 512  ;;  %p2448_p4 = scmp.lt.s32.totalorder %s520_s24, %s520_s24 }
  0x9e   : > { %p2441_p5 = scmp.ne.s32.totalorder %s520_s24, %s2440_s16  ;;  %p2449_p10 = scmp.lt.s32.totalorder %s2440_s16, %s2440_s16 }
  0xa0   : > { %p2443_p7 = pnand %p2441_p5, %p2990_p8  ;;  %p2450_p11 = por %p2449_p10, %p2448_p4 }
  0xa2   : > { %p2444_p9 = pneg %p2443_p7 }
  0xa4   : > { %p2451_p12 = pnand %p2450_p11, %p2444_p9 }
  0xa6   : > { %2454 = shalt.err (!%p2451_p12)
}
  0xa7   : > { %2123 = dma.hbm_to_vmem [thread:$0]  (!%p2974_p6), %s3552_s11, 512, %s520_s24, [#allocation22], %s2824_s25, %s2824_s25, %s2825_s0  }
  0xa8   : > { %s2455_s29 = scalar_lea.hbm %s3554_s13, 16 }
  0xa9   : > { %p2456_p13 = scmp.ne.s32.totalorder %s3554_s13, %s2455_s29  ;;  %p2462_p3 = scmp.lt.u32.totalorder %s2455_s29, %s3554_s13 }
  0xab   : > { %p2458_p0 = pnand %p2456_p13, %p2990_p8 }
  0xad   : > { %p2459_p1 = pneg %p2458_p0 }
  0xaf   : > { %p2464_p2 = pnand %p2462_p3, %p2459_p1 }
  0xb1   : > { %2467 = shalt.err (!%p2464_p2)
}
  0xb2   : > { %s2468_s20 = scalar_lea.vmem %s545_s17, 16  ;;  %s2475_s25 = scalar_lea.vmem %s545_s17, 32 }
  0xb3   : > { %p2469_p5 = scmp.ne.s32.totalorder %s545_s17, %s2468_s20  ;;  %p2476_p4 = scmp.lt.s32.totalorder %s545_s17, %s545_s17 }
  0xb4   : > { %p2477_p10 = scmp.lt.s32.totalorder %s2475_s25, %s2468_s20 }
  0xb5   : > { %p2471_p7 = pnand %p2469_p5, %p2990_p8 }
  0xb6   : > { %p2478_p11 = por %p2477_p10, %p2476_p4 }
  0xb7   : > { %p2472_p9 = pneg %p2471_p7 }
  0xb9   : > { %p2479_p12 = pnand %p2478_p11, %p2472_p9 }
  0xbb   : > { %2482 = shalt.err (!%p2479_p12)
}
  0xbc   : > { %2129 = dma.hbm_to_vmem [thread:$0]  (!%p2974_p6), %s3554_s13, 16, %s545_s17, [#allocation25]  }
  0xbd   : > { %s2830_s16 = smov [#allocation8]   ;;  %s2831_s19 = smov [#allocation11]  }
  0xbe   : > { %s415_s18 = sshll.u32 %s2830_s16, 4  ;;  %s439_s1 = sshll.u32 %s2831_s19, 4  ;;  %s416_s18 = int_to_ptr.vmem [resolvable:$true] %s415_s18  ;;  %s440_s1 = int_to_ptr.vmem [resolvable:$true] %s439_s1 }
  0xbf   : > { %s3583_s2 = sld [smem:[#allocation44_spill]] }
  0xc5   : > { %s2483_s15 = scalar_lea.hbm %s3583_s2, 16 }
  0xc6   : > { %p2484_p13 = scmp.ne.s32.totalorder %s3583_s2, %s2483_s15  ;;  %p2490_p3 = scmp.lt.u32.totalorder %s2483_s15, %s3583_s2 }
  0xc8   : > { %p2486_p0 = pnand %p2484_p13, %p2990_p8 }
  0xca   : > { %p2487_p1 = pneg %p2486_p0 }
  0xcc   : > { %p2492_p2 = pnand %p2490_p3, %p2487_p1 }
  0xce   : > { %2495 = shalt.err (!%p2492_p2)
}
  0xcf   : > { %s2496_s17 = scalar_lea.vmem %s416_s18, 16  ;;  %s2503_s25 = scalar_lea.vmem %s416_s18, 32 }
  0xd0   : > { %p2497_p5 = scmp.ne.s32.totalorder %s416_s18, %s2496_s17  ;;  %p2504_p4 = scmp.lt.s32.totalorder %s416_s18, %s416_s18 }
  0xd1   : > { %p2505_p10 = scmp.lt.s32.totalorder %s2503_s25, %s2496_s17 }
  0xd2   : > { %p2499_p7 = pnand %p2497_p5, %p2990_p8 }
  0xd3   : > { %p2506_p11 = por %p2505_p10, %p2504_p4 }
  0xd4   : > { %p2500_p9 = pneg %p2499_p7 }
  0xd6   : > { %p2507_p12 = pnand %p2506_p11, %p2500_p9 }
  0xd8   : > { %2510 = shalt.err (!%p2507_p12)
}
  0xd9   : > { %2096 = dma.hbm_to_vmem [thread:$0]  (!%p2974_p6), %s3583_s2, 16, %s416_s18, [#allocation7]  }
  0xda   : > { %s2511_s22 = scalar_lea.hbm %s3545_s4, 16 }
  0xdb   : > { %p2512_p13 = scmp.ne.s32.totalorder %s3545_s4, %s2511_s22  ;;  %p2518_p3 = scmp.lt.u32.totalorder %s2511_s22, %s3545_s4 }
  0xdd   : > { %p2514_p0 = pnand %p2512_p13, %p2990_p8 }
  0xdf   : > { %p2515_p1 = pneg %p2514_p0 }
  0xe1   : > { %p2520_p2 = pnand %p2518_p3, %p2515_p1 }
  0xe3   : > { %2523 = shalt.err (!%p2520_p2)
}
  0xe4   : > { %s2524_s30 = scalar_lea.vmem %s440_s1, 16  ;;  %s2531_s18 = scalar_lea.vmem %s440_s1, 32 }
  0xe5   : > { %p2525_p5 = scmp.ne.s32.totalorder %s440_s1, %s2524_s30  ;;  %p2532_p4 = scmp.lt.s32.totalorder %s440_s1, %s440_s1 }
  0xe6   : > { %p2533_p10 = scmp.lt.s32.totalorder %s2531_s18, %s2524_s30 }
  0xe7   : > { %p2527_p7 = pnand %p2525_p5, %p2990_p8 }
  0xe8   : > { %p2534_p11 = por %p2533_p10, %p2532_p4 }
  0xe9   : > { %p2528_p9 = pneg %p2527_p7 }
  0xeb   : > { %p2535_p12 = pnand %p2534_p11, %p2528_p9 }
  0xed   : > { %2538 = shalt.err (!%p2535_p12)
}
  0xee   : > { %2102 = dma.hbm_to_vmem [thread:$0]  (!%p2974_p6), %s3545_s4, 16, %s440_s1, [#allocation10]  }
  0xef   : > { %s2832_s25 = smov [#allocation14]   ;;  %s2833_s24 = smov [#allocation17]  }
  0xf0   : > { %s463_s0 = sshll.u32 %s2832_s25, 4  ;;  %s485_s16 = sshll.u32 %s2833_s24, 4  ;;  %s464_s0 = int_to_ptr.vmem [resolvable:$true] %s463_s0  ;;  %s486_s16 = int_to_ptr.vmem [resolvable:$true] %s485_s16 }
  0xf1   : > { %s2539_s29 = scalar_lea.hbm %s3547_s6, 16 }
  0xf2   : > { %p2540_p13 = scmp.ne.s32.totalorder %s3547_s6, %s2539_s29  ;;  %p2546_p3 = scmp.lt.u32.totalorder %s2539_s29, %s3547_s6 }
  0xf4   : > { %p2542_p0 = pnand %p2540_p13, %p2990_p8 }
  0xf6   : > { %p2543_p1 = pneg %p2542_p0 }
  0xf8   : > { %p2548_p2 = pnand %p2546_p3, %p2543_p1 }
  0xfa   : > { %2551 = shalt.err (!%p2548_p2)
}
  0xfb   : > { %s2552_s1 = scalar_lea.vmem %s464_s0, 16  ;;  %s2559_s18 = scalar_lea.vmem %s464_s0, 32 }
  0xfc   : > { %p2553_p5 = scmp.ne.s32.totalorder %s464_s0, %s2552_s1  ;;  %p2560_p4 = scmp.lt.s32.totalorder %s464_s0, %s464_s0 }
  0xfd   : > { %p2561_p10 = scmp.lt.s32.totalorder %s2559_s18, %s2552_s1 }
  0xfe   : > { %p2555_p7 = pnand %p2553_p5, %p2990_p8 }
  0xff   : > { %p2562_p11 = por %p2561_p10, %p2560_p4 }
 0x100   : > { %p2556_p9 = pneg %p2555_p7 }
 0x102   : > { %p2563_p12 = pnand %p2562_p11, %p2556_p9 }
 0x104   : > { %2566 = shalt.err (!%p2563_p12)
}
 0x105   : > { %2108 = dma.hbm_to_vmem [thread:$0]  (!%p2974_p6), %s3547_s6, 16, %s464_s0, [#allocation13]  }
 0x106   : > { %s2567_s19 = scalar_lea.hbm %s3549_s8, 16 }
 0x107   : > { %p2568_p13 = scmp.ne.s32.totalorder %s3549_s8, %s2567_s19  ;;  %p2574_p3 = scmp.lt.u32.totalorder %s2567_s19, %s3549_s8 }
 0x109   : > { %p2570_p0 = pnand %p2568_p13, %p2990_p8 }
 0x10b   : > { %p2571_p1 = pneg %p2570_p0 }
 0x10d   : > { %p2576_p2 = pnand %p2574_p3, %p2571_p1 }
 0x10f   : > { %2579 = shalt.err (!%p2576_p2)
}
 0x110   : > { %s2580_s23 = scalar_lea.vmem %s486_s16, 16  ;;  %s2587_s0 = scalar_lea.vmem %s486_s16, 32 }
 0x111   : > { %p2581_p5 = scmp.ne.s32.totalorder %s486_s16, %s2580_s23  ;;  %p2588_p4 = scmp.lt.s32.totalorder %s486_s16, %s486_s16 }
 0x112   : > { %p2589_p10 = scmp.lt.s32.totalorder %s2587_s0, %s2580_s23 }
 0x113   : > { %p2583_p7 = pnand %p2581_p5, %p2990_p8 }
 0x114   : > { %p2590_p11 = por %p2589_p10, %p2588_p4 }
 0x115   : > { %p2584_p9 = pneg %p2583_p7 }
 0x117   : > { %p2591_p12 = pnand %p2590_p11, %p2584_p9 }
 0x119   : > { %2594 = shalt.err (!%p2591_p12)
}
 0x11a   : > { %2114 = dma.hbm_to_vmem [thread:$0]  (!%p2974_p6), %s3549_s8, 16, %s486_s16, [#allocation16]  }
 0x11b   : > { %s2834_s18 = smov [#allocation20]   ;;  %s2835_s17 = smov [#allocation23]  }
 0x11c   : > { %s509_s20 = sshll.u32 %s2834_s18, 4  ;;  %s533_s25 = sshll.u32 %s2835_s17, 4  ;;  %s510_s20 = int_to_ptr.vmem [resolvable:$true] %s509_s20  ;;  %s534_s25 = int_to_ptr.vmem [resolvable:$true] %s533_s25 }
 0x11d   : > { %s2595_s22 = scalar_lea.hbm %s3551_s10, 16 }
 0x11e   : > { %p2596_p13 = scmp.ne.s32.totalorder %s3551_s10, %s2595_s22  ;;  %p2602_p3 = scmp.lt.u32.totalorder %s2595_s22, %s3551_s10 }
 0x120   : > { %p2598_p0 = pnand %p2596_p13, %p2990_p8 }
 0x122   : > { %p2599_p1 = pneg %p2598_p0 }
 0x124   : > { %p2604_p2 = pnand %p2602_p3, %p2599_p1 }
 0x126   : > { %2607 = shalt.err (!%p2604_p2)
}
 0x127   : > { %s2608_s16 = scalar_lea.vmem %s510_s20, 16  ;;  %s2615_s0 = scalar_lea.vmem %s510_s20, 32 }
 0x128   : > { %p2609_p5 = scmp.ne.s32.totalorder %s510_s20, %s2608_s16  ;;  %p2616_p4 = scmp.lt.s32.totalorder %s510_s20, %s510_s20 }
 0x129   : > { %p2617_p10 = scmp.lt.s32.totalorder %s2615_s0, %s2608_s16 }
 0x12a   : > { %p2611_p7 = pnand %p2609_p5, %p2990_p8 }
 0x12b   : > { %p2618_p11 = por %p2617_p10, %p2616_p4 }
 0x12c   : > { %p2612_p9 = pneg %p2611_p7 }
 0x12e   : > { %p2619_p12 = pnand %p2618_p11, %p2612_p9 }
 0x130   : > { %2622 = shalt.err (!%p2619_p12)
}
 0x131   : > { %2120 = dma.hbm_to_vmem [thread:$0]  (!%p2974_p6), %s3551_s10, 16, %s510_s20, [#allocation19]  }
 0x132   : > { %s2623_s24 = scalar_lea.hbm %s3553_s12, 16 }
 0x133   : > { %p2624_p13 = scmp.ne.s32.totalorder %s3553_s12, %s2623_s24  ;;  %p2630_p3 = scmp.lt.u32.totalorder %s2623_s24, %s3553_s12 }
 0x135   : > { %p2626_p0 = pnand %p2624_p13, %p2990_p8 }
 0x137   : > { %p2627_p1 = pneg %p2626_p0 }
 0x139   : > { %p2632_p2 = pnand %p2630_p3, %p2627_p1 }
 0x13b   : > { %2635 = shalt.err (!%p2632_p2)
}
 0x13c   : > { %s2636_s27 = scalar_lea.vmem %s534_s25, 16  ;;  %s2643_s20 = scalar_lea.vmem %s534_s25, 32 }
 0x13d   : > { %p2637_p5 = scmp.ne.s32.totalorder %s534_s25, %s2636_s27  ;;  %p2644_p4 = scmp.lt.s32.totalorder %s534_s25, %s534_s25 }
 0x13e   : > { %p2645_p10 = scmp.lt.s32.totalorder %s2643_s20, %s2636_s27 }
 0x13f   : > { %p2639_p7 = pnand %p2637_p5, %p2990_p8 }
 0x140   : > { %p2646_p11 = por %p2645_p10, %p2644_p4 }
 0x141   : > { %p2640_p9 = pneg %p2639_p7 }
 0x143   : > { %p2647_p12 = pnand %p2646_p11, %p2640_p9 }
 0x145   : > { %2650 = shalt.err (!%p2647_p12)
}
 0x146   : > { %2126 = dma.hbm_to_vmem [thread:$0]  (!%p2974_p6), %s3553_s12, 16, %s534_s25, [#allocation22]  }
 0x147   : > { %s2836_s0 = smov [#allocation26]   ;;  %s2651_s17 = scalar_lea.hbm %s3555_s14, 16 }
 0x148   : > { %s555_s30 = sshll.u32 %s2836_s0, 4  ;;  %p2652_p13 = scmp.ne.s32.totalorder %s3555_s14, %s2651_s17  ;;  %s556_s30 = int_to_ptr.vmem [resolvable:$true] %s555_s30 }
 0x149   : > { %p2658_p3 = scmp.lt.u32.totalorder %s2651_s17, %s3555_s14 }
 0x14a   : > { %p2654_p0 = pnand %p2652_p13, %p2990_p8 }
 0x14c   : > { %p2655_p1 = pneg %p2654_p0 }
 0x14e   : > { %p2660_p2 = pnand %p2658_p3, %p2655_p1 }
 0x150   : > { %2663 = shalt.err (!%p2660_p2)
}
 0x151   : > { %s2664_s25 = scalar_lea.vmem %s556_s30, 16  ;;  %s2671_s15 = scalar_lea.vmem %s556_s30, 32 }
 0x152   : > { %p2665_p5 = scmp.ne.s32.totalorder %s556_s30, %s2664_s25  ;;  %p2672_p4 = scmp.lt.s32.totalorder %s556_s30, %s556_s30 }
 0x153   : > { %p2673_p10 = scmp.lt.s32.totalorder %s2671_s15, %s2664_s25 }
 0x154   : > { %p2667_p7 = pnand %p2665_p5, %p2990_p8 }
 0x155   : > { %p2674_p11 = por %p2673_p10, %p2672_p4 }
 0x156   : > { %p2668_p9 = pneg %p2667_p7 }
 0x158   : > { %p2675_p12 = pnand %p2674_p11, %p2668_p9 }
 0x15a   : > { %2678 = shalt.err (!%p2675_p12)
}
 0x15b   : > { %s3584_s23 = sld [smem:[#allocation39_spill]]  ;;  %s3585_s16 = sld [smem:[#allocation38_spill]] }
 0x15c   : > { %s3586_s26 = sld [smem:[#allocation37_spill]]  ;;  %s3587_s0 = sld [smem:[#allocation40_spill]] }
 0x15d   : > { %2132 = dma.hbm_to_vmem [thread:$0]  (!%p2974_p6), %s3555_s14, 16, %s556_s30, [#allocation25]  }
 0x15e   : > { %s1825_s1 = sadd.s32 4294967294, %s2811_s21   ;;  %s3272_s28 = sadd.s32 1, %s2811_s21  }
 0x15f   : > { %s42_s18 = ssub.s32 %s2811_s21, %s3272_s28  ;;  %p53_p0 = scmp.eq.s32.totalorder %s2811_s21, 0 }
 0x160   : > { %p43_p8 = scmp.eq.s32.totalorder %s42_s18, 0  ;;  %p382_p7 = scmp.eq.s32.totalorder %s1825_s1, 1 }
 0x161   : > { %s45_s17 = sadd.s32 1, %s3584_s23  ;;  %p52_p13 = scmp.ne.s32.totalorder %s3584_s23, %s3585_s16 }
 0x162   : > { %p58_p1 = scmp.ne.s32.totalorder %s3585_s16, %s3586_s26  ;;  %p3589_p2 = scmp.eq.s32.totalorder %s3587_s0, 0 }
 0x163   : > { %s3283_s24 = scalar_select %p43_p8, %s3584_s23, %s45_s17  }
 0x164   : > { %p3285_p3 = por %p53_p0, %p52_p13  ;;  %p3291_p6 = por %p3589_p2, %p58_p1 }
 0x165   : > { %p376_p5 = scmp.eq.s32.totalorder %s3587_s0, 1  ;;  %p2155_p9 = scmp.lt.s32.totalorder %s2811_s21, 2 }
 0x166   : > { %s566_s22 = sand.u32 1, %s3584_s23   ;;  %p3302_p10 = por %p382_p7, %p58_p1 }
 0x167   : > { %p3298_p4 = por %p376_p5, %p52_p13  ;;  %s1842_s15 = sshll.u32 %s566_s22, 3 }
 0x168   : > { %s3592_s25 = scalar_select %p3302_p10, 1, 0 }
 0x169   : > { %s3591_s29 = scalar_select %p3298_p4, 1, 0 }
 0x16a   : > { %s1843_s27 = sshll.u32 %s2811_s21, 7  ;;  %s3593_s26 = sld [smem:[#allocation42_spill]] }
 0x16b   : > { %s570_s23 = scalar_lea.vmem [#allocation3], %s1842_s15  ;;  %p3316_p11 = pnand %p2155_p9, %p3285_p3 }
 0x16c   : > { %s577_s0 = sshll.u32 %s570_s23, 4  ;;  %s567_s17 = scalar_lea.sflag [#allocation4], %s566_s22  ;;  %s3312_s0 = int_to_ptr.vmem [resolvable:$true] %s577_s0 }
 0x16d   : > { %p2681_p8 = pneg %p3316_p11 }
 0x170   : > { %s3310_s18 = scalar_lea.hbm %s3593_s26, %s1843_s27  ;;  %s2684_s20 = scalar_lea.hbm %s3593_s26, 256 }
 0x171   : > { %s2679_s2 = scalar_lea.hbm %s3310_s18, 128  ;;  %p2685_p1 = scmp.lt.u32.totalorder %s3310_s18, %s3593_s26 }
 0x172   : > { %p2680_p12 = scmp.ne.s32.totalorder %s3310_s18, %s2679_s2  ;;  %p2686_p3 = scmp.lt.u32.totalorder %s2684_s20, %s2679_s2 }
 0x173   : > { %p2688_p5 = scmp.lt.u32.totalorder %s2679_s2, %s3310_s18 }
 0x174   : > { %p2682_p13 = pnand %p2681_p8, %p2680_p12  ;;  %p2687_p2 = por %p2686_p3, %p2685_p1 }
 0x176   : > { %p2683_p0 = pneg %p2682_p13  ;;  %p2689_p7 = por %p2688_p5, %p2687_p2 }
 0x178   : > { %p2690_p9 = pnand %p2689_p7, %p2683_p0 }
 0x17a   : > { %2693 = shalt.err (!%p2690_p9)
}
 0x17b   : > { %s2694_s22 = scalar_lea.vmem %s3312_s0, 128  ;;  %s2837_s23 = smov [#allocation3]  }
 0x17c   : > { %p2695_p12 = scmp.ne.s32.totalorder %s3312_s0, %s2694_s22  ;;  %s2699_s15 = sshll.u32 %s2837_s23, 4  ;;  %s2700_s15 = int_to_ptr.vmem [resolvable:$false] %s2699_s15 }
 0x17d   : > { %s2701_s27 = scalar_lea.vmem %s2700_s15, 256  ;;  %p2702_p4 = scmp.lt.s32.totalorder %s3312_s0, %s2700_s15 }
 0x17e   : > { %p2697_p13 = pnand %p2695_p12, %p2681_p8  ;;  %p2703_p1 = scmp.lt.s32.totalorder %s2701_s27, %s2694_s22 }
 0x180   : > { %p2698_p10 = pneg %p2697_p13  ;;  %p2704_p3 = por %p2703_p1, %p2702_p4 }
 0x182   : > { %p2705_p2 = pnand %p2704_p3, %p2698_p10 }
 0x184   : > { %2708 = shalt.err (!%p2705_p2)
}
 0x185   : > { %2136 = dma.hbm_to_vmem [thread:$0]  (!%p3316_p11), %s3310_s18, 128, %s3312_s0, %s567_s17  }
 0x186   : > { %s3595_s2 = sld [smem:[#allocation41_spill]] }
 0x18c   : > { %p3596_p0 = scmp.ne.s32.totalorder %s3595_s2, 0 }
 0x18d   : > { %s3597_s20 = sld [smem:[#allocation38_spill]] (!%p3596_p0) }
 0x18e   : > { %586 = sbr.rel (%p3596_p0) target bundleno = 3248 (0xcb0), region = 80 }
 0x193   : > { %s3348_s19 = sand.u32 (!%p3596_p0), 1, %s3597_s20  }
 0x194   : > { %s1845_s16 = sshll.u32 (!%p3596_p0), %s3348_s19, 3  ;;  %s589_s22 = scalar_lea.sflag (!%p3596_p0), [#allocation4], %s3348_s19 }
 0x195   : > { %s592_s23 = scalar_lea.vmem [#allocation3], %s1845_s16 }
 0x196   : > { %2762 = dma.done.wait (%p3291_p6), %s589_s22, 128  }
 0x197   : > { %2764 = vsyncadd (%p3291_p6), %s589_s22, 4294967168  ;;  %s3598_s18 = sld [smem:[#allocation40_spill]] }
 0x19d   : > { %p3599_p4 = scmp.eq.s32.totalorder %s3598_s18, 0 }
 0x19f   : > { %2766 = dma.done.wait (%p3599_p4), [#allocation7], 272   ;;  %p3600_p10 = pmov %p3599_p4 }
 0x1a0   : > { %p3601_p11 = pmov %p3599_p4 }
 0x1a1   : > { %2768 = vsyncadd (%p3600_p10), [#allocation7], 4294967024 }
 0x1a2   : > { %2770 = dma.done.wait (%p3601_p11), [#allocation10], 272   ;;  %p3602_p8 = pmov %p3599_p4 }
 0x1a3   : > { %p3603_p5 = pmov %p3599_p4 }
 0x1a4   : > { %2772 = vsyncadd (%p3602_p8), [#allocation10], 4294967024 }
 0x1a5   : > { %2774 = dma.done.wait (%p3603_p5), [#allocation13], 272   ;;  %p3604_p7 = pmov %p3599_p4 }
 0x1a6   : > { %p3605_p6 = pmov %p3599_p4 }
 0x1a7   : > { %2776 = vsyncadd (%p3604_p7), [#allocation13], 4294967024 }
 0x1a8   : > { %2778 = dma.done.wait (%p3605_p6), [#allocation16], 32   ;;  %p3606_p9 = pmov %p3599_p4 }
 0x1a9   : > { %p3607_p12 = pmov %p3599_p4 }
 0x1aa   : > { %2780 = vsyncadd (%p3606_p9), [#allocation16], 4294967264 }
 0x1ab   : > { %2782 = dma.done.wait (%p3607_p12), [#allocation19], 272   ;;  %p3608_p13 = pmov %p3599_p4 }
 0x1ac   : > { %p3609_p1 = pmov %p3599_p4 }
 0x1ad   : > { %2784 = vsyncadd (%p3608_p13), [#allocation19], 4294967024 }
 0x1ae   : > { %2786 = dma.done.wait (%p3609_p1), [#allocation22], 528   ;;  %p3610_p3 = pmov %p3609_p1 }
 0x1af   : > { %p3611_p2 = pmov %p3609_p1 }
 0x1b0   : > { %2788 = vsyncadd (%p3610_p3), [#allocation22], 4294966768 }
 0x1b1   : > { %2790 = dma.done.wait (%p3611_p2), [#allocation25], 32   ;;  %p3612_p0 = pmov %p3609_p1 }
 0x1b2   : > { %v2838_v0 = vmov 0.0   ;;  %vm2839_vm0 = vmmov 0   ;;  %v2253_v1 = vld [vmem:[#allocation6] sm:$0xff]   ;;  %v2254_v2 = vld [vmem:[#allocation6 + $0x8] sm:$0xff]   ;;  %v696_v3 = vld [vmem:[%s592_s23] sm:$0xff]  ;;  %vm721_vm1 = vcmask 261120  }
 0x1b3   : > { %2792 = vsyncadd (%p3612_p0), [#allocation25], 4294967264  ;;  %1938 = vmatprep.subr.bf16.mxu0 %v2838_v0  ;;  %1942 = vmatprep.mubr.msk.bf16.mxu0 %vm2839_vm0, %v2838_v0  ;;  %v697_v4 = vpack.c.bf16 %v696_v3, %v696_v3  ;;  %v1861_v5 = vld [vmem:[#allocation8] ss:$0 sm:$0xff]  ;;  %s3389_s30 = scalar_lea.vmem [#allocation27], %s1845_s16  ;;  %s3393_s0 = smov 0  }
 0x1b4   : > { %1939 = vmatpush3.bf16.msra.mxu0 %v2253_v1 }
 0x1b5   : > { %1940 = vmatprep.subr.bf16.mxu0 %v2838_v0 }
 0x1b8   : > { %1941 = vmatpush3.bf16.msra.mxu0 %v2254_v2 }
 0x1bb   : > { %1943 = vmatmul.mubr.msk.bf16.vlgmr.msra.gmra.mrb[0].mxu0 %vm721_vm1, %v697_v4 }
 0x28e   : > { %v759_v6 = vpop.f32.mrb[0].mxu0 }
 0x28f   : > { %v760_v7 = vadd.f32 %v1861_v5, %v759_v6   ;;  %v1944_v8 = vpop.f32.mrb[1].mxu0 }
 0x290   : > { %v762_v9 = vpop.f32.mrb[2].mxu0 }
 0x291   : > { %v1945_v10 = vpop.f32.mrb[3].mxu0 }
 0x292 LB: >> { %v2255_v11 = vld [vmem:[#allocation9] sm:$0xff]   ;;  %v2840_v12 = vmov 0.0   ;;  %v2256_v13 = vld [vmem:[#allocation9 + $0x8] sm:$0xff]   ;;  %vm2841_vm2 = vmmov 0   ;;  %v772_v14 = vpack.c.bf16 %v2815_v7, %v2815_v7  ;;  %v1865_v15 = vld [vmem:[#allocation11] ss:$0 sm:$0xff]  ;;  %s2819_s0 = sphi %s3393_s0, %s770_s0   ;;  %v2815_v7 = vphi %v760_v7, %v3613_v7  }
 0x293   : >> { %1946 = vmatprep.subr.bf16.mxu0 %v2840_v12  ;;  %1954 = vmatprep.subr.bf16.mxu1 %v2840_v12  ;;  %s2842_s1 = smov 120   ;;  %s2843_s17 = smov 96   ;;  %vm843_vm3 = vcmask 64512   ;;  %vm907_vm4 = vcmask 1043456   ;;  %vm952_vm5 = vcmask 60416   ;;  %vm1071_vm6 = vcmask 126016  }
 0x294   : >> { %1947 = vmatpush3.bf16.msra.mxu0 %v2255_v11  ;;  %1950 = vmatprep.mubr.msk.bf16.mxu0 %vm2841_vm2, %v2840_v12  ;;  %s2844_s15 = smov 80   ;;  %s2845_s27 = smov 88   ;;  %vm1190_vm7 = vcmask 191616   ;;  %vm1309_vm8 = vcmask 257216   ;;  %vm1525_vm9 = vcmask 523264  }
 0x295   : >> { %1948 = vmatprep.subr.bf16.mxu0 %v2840_v12  ;;  %1956 = vmatprep.mubr.msk.bf16.mxu1 %vm2841_vm2, %v2840_v12  ;;  %s2846_s2 = smov 72   ;;  %s2847_s20 = smov 112  }
 0x296   : >> { %s2848_s16 = smov 104   ;;  %s2849_s22 = smov 56  }
 0x297   : >> { %s2850_s23 = smov 64   ;;  %s2851_s18 = smov 40  }
 0x298   : >> { %1949 = vmatpush3.bf16.msra.mxu0 %v2256_v13  ;;  %s770_s0 = sadd.s32 1, %s2819_s0  }
 0x299   : >> { %1960 = vmatprep.subr.bf16.mxu0 %v2840_v12  ;;  %p767_p4 = scmp.ge.s32.totalorder %s770_s0, 2  }
 0x29a   : > { %p3616_p11 = scmp.ne.s32.totalorder (%p767_p4), %s3591_s29, 0  ;;  %s2856_s0 = smov (%p767_p4), [#allocation27]  }
 0x29b   : >> { %1951 = vmatmul.mubr.msk.bf16.vlgmr.msra.gmra.mrb[0].mxu0 %vm721_vm1, %v772_v14 }
 0x29c   : >> { %1962 = vmatprep.mubr.msk.bf16.mxu0 %vm2841_vm2, %v2840_v12 }
 0x36e   : >> { %v833_v16 = vpop.f32.mrb[0].mxu0 }
 0x36f   : >> { %v834_v17 = vadd.f32 %v1865_v15, %v833_v16  ;;  %v1952_v18 = vpop.f32.mrb[1].mxu0 }
 0x370   : >> { %v836_v19 = vpop.f32.mrb[2].mxu0 }
 0x371   : >> { %v3414_v20 = vpack.c.bf16 %v834_v17, %v834_v17  ;;  %v1953_v21 = vpop.f32.mrb[3].mxu0 }
 0x373   : >> { %954 = vrot.lane.b32.xlu1 %v3414_v20, %s2842_s1  ;;  %841 = vrot.lane.b32.xlu0 %v3414_v20, %s2843_s17  ;;  %s2852_s1 = smov 48   ;;  %s2853_s17 = smov 8  }
 0x377   : >> { %1075 = vrot.lane.b32.xlu1 %v3414_v20, %s2844_s15  ;;  %956 = vrot.lane.b32.xlu0 %v3414_v20, %s2845_s27  ;;  %s2854_s15 = smov 16   ;;  %s2855_s27 = smov 24  }
 0x37b   : >> { %1194 = vrot.lane.b32.xlu1 %v3414_v20, %s2846_s2  ;;  %1073 = vrot.lane.b32.xlu0 %v3414_v20, %s2847_s20  ;;  %s3614_s2 = sld [smem:[#allocation40_spill]] (%p767_p4) }
 0x37f   : >> { %1192 = vrot.lane.b32.xlu0 %v3414_v20, %s2848_s16 }
 0x381   : > { %s1899_s20 = sshll.u32 (%p767_p4), %s3614_s2, 7 }
 0x3e5   : >> { %v842_v22 = vpop.permute.xlu0 %841  ;;  %v955_v25 = vpop.permute.xlu1 %954 }
 0x3e6   : >> { %v848_v23 = vsel %vm843_vm3, %v842_v22, 0 }
 0x3e7   : >> { %1955 = vmatpush3.bf16.xpose.msra.mxu1 %v848_v23 }
 0x3e8   : >> { %1966 = vmatprep.subr.bf16.mxu1 %v2840_v12 }
 0x3e9   : >> { %v957_v24 = vpop.permute.xlu0 %956  ;;  %v1076_v27 = vpop.permute.xlu1 %1075 }
 0x3ea   : >> { %v962_v26 = vsel %vm843_vm3, %v957_v24, 0  ;;  %v1081_v28 = vsel %vm843_vm3, %v1076_v27, 0 }
 0x3ed   : >> { %v1195_v29 = vpop.permute.xlu1 %1194  ;;  %v1074_v30 = vpop.permute.xlu0 %1073 }
 0x3ee   : >> { %1957 = vmatmul.mubr.msk.bf16.vlgmr.msra.gmra.mrb[0].mxu1 %vm843_vm3, %v3414_v20  ;;  %v1200_v31 = vsel %vm843_vm3, %v1195_v29, 0 }
 0x3ef   : >> { %1967 = vmatpush3.bf16.xpose.msra.mxu1 %v962_v26  ;;  %1968 = vmatprep.mubr.msk.bf16.mxu1 %vm2841_vm2, %v2840_v12 }
 0x3f0   : >> { %1978 = vmatprep.subr.bf16.mxu1 %v2840_v12 }
 0x3f1   : >> { %v1193_v32 = vpop.permute.xlu0 %1192 }
 0x3f6   : >> { %1969 = vmatmul.mubr.msk.bf16.vlgmr.msra.gmra.mrb[4].mxu1 %vm843_vm3, %v955_v25 }
 0x3f7   : >> { %1979 = vmatpush3.bf16.xpose.msra.mxu1 %v1081_v28  ;;  %1980 = vmatprep.mubr.msk.bf16.mxu1 %vm2841_vm2, %v2840_v12 }
 0x3f8   : >> { %1990 = vmatprep.subr.bf16.mxu1 %v2840_v12 }
 0x3fe   : >> { %1981 = vmatmul.mubr.msk.bf16.vlgmr.msra.gmra.mrb[8].mxu1 %vm843_vm3, %v1074_v30 }
 0x3ff   : >> { %1991 = vmatpush3.bf16.xpose.msra.mxu1 %v1200_v31  ;;  %1992 = vmatprep.mubr.msk.bf16.mxu1 %vm2841_vm2, %v2840_v12 }
 0x400   : >> { %2002 = vmatprep.subr.bf16.mxu1 %v2840_v12 }
 0x406   : >> { %1993 = vmatmul.mubr.msk.bf16.vlgmr.msra.gmra.mrb[12].mxu1 %vm843_vm3, %v1193_v32 }
 0x407   : >> { %2006 = vmatprep.mubr.msk.bf16.mxu1 %vm2841_vm2, %v2840_v12 }
 0x4c1   : >> { %v884_v33 = vpop.f32.mrb[0].mxu1 }
 0x4c2   : >> { %v1958_v34 = vpop.f32.mrb[1].mxu1  ;;  %v890_v35 = vsel %vm843_vm3, %v884_v33, -inf }
 0x4c3   : >> { %891 = vmax.xlane.f32.xlu1 %v890_v35  ;;  %v887_v36 = vpop.f32.mrb[2].mxu1 }
 0x4c4   : >> { %v1959_v37 = vpop.f32.mrb[3].mxu1 }
 0x4c9   : >> { %v998_v38 = vpop.f32.mrb[4].mxu1 }
 0x4ca   : >> { %v1970_v39 = vpop.f32.mrb[5].mxu1  ;;  %v1004_v40 = vsel %vm843_vm3, %v998_v38, -inf }
 0x4cb   : >> { %1005 = vmax.xlane.f32.xlu0 %v1004_v40  ;;  %v1001_v41 = vpop.f32.mrb[6].mxu1 }
 0x4cc   : >> { %v1971_v42 = vpop.f32.mrb[7].mxu1 }
 0x4d1   : >> { %v1117_v43 = vpop.f32.mrb[8].mxu1 }
 0x4d2   : >> { %v1982_v44 = vpop.f32.mrb[9].mxu1  ;;  %v1123_v45 = vsel %vm843_vm3, %v1117_v43, -inf }
 0x4d3   : >> { %1124 = vmax.xlane.f32.xlu0 %v1123_v45  ;;  %v1120_v46 = vpop.f32.mrb[10].mxu1  ;;  %v2257_v45 = vld [vmem:[#allocation12] sm:$0xff]  }
 0x4d4   : >> { %v1983_v47 = vpop.f32.mrb[11].mxu1  ;;  %2003 = vmatpush3.bf16.msra.mxu1 %v2257_v45  ;;  %v2258_v46 = vld [vmem:[#allocation12 + $0x8] sm:$0xff]  }
 0x4d5   : >> { %2004 = vmatprep.subr.bf16.mxu1 %v2840_v12 }
 0x4d8   : >> { %2005 = vmatpush3.bf16.msra.mxu1 %v2258_v46 }
 0x4d9   : >> { %v1236_v48 = vpop.f32.mrb[12].mxu1  ;;  %2018 = vmatprep.subr.bf16.mxu1 %v2840_v12 }
 0x4da   : >> { %v1994_v49 = vpop.f32.mrb[13].mxu1  ;;  %v1242_v50 = vsel %vm843_vm3, %v1236_v48, -inf }
 0x4db   : >> { %1243 = vmax.xlane.f32.xlu1 %v1242_v50  ;;  %v1239_v51 = vpop.f32.mrb[14].mxu1 }
 0x4dc   : >> { %v1995_v52 = vpop.f32.mrb[15].mxu1 }
 0x550   : >> { %v892_v53 = vpop.xlane.xlu1 %891 }
 0x551   : >> { %v893_v54 = vsub.f32 %v884_v33, %v892_v53 }
 0x553   : >> { %v894_v55 = vmul.f32 1.442695, %v893_v54 }
 0x555   : >> { %2265 = vpow2.f32 %v894_v55 }
 0x558   : >> { %v1006_v56 = vpop.xlane.xlu0 %1005 }
 0x559   : >> { %v1007_v57 = vsub.f32 %v998_v38, %v1006_v56 }
 0x55b   : >> { %v1008_v58 = vmul.f32 1.442695, %v1007_v57 }
 0x55d   : >> { %2267 = vpow2.f32 %v1008_v58 }
 0x55f   : >> { %v2266_v59 = vpop.eup %2265 }
 0x560   : >> { %v1125_v60 = vpop.xlane.xlu0 %1124  ;;  %v896_v61 = vsel %vm843_vm3, %v2266_v59, 0.0 }
 0x561   : >> { %v1126_v62 = vsub.f32 %v1117_v43, %v1125_v60  ;;  %897 = vadd.xlane.f32.xlu0 %v896_v61  ;;  %v1880_v61 = vld [vmem:[#allocation14] ss:$0 sm:$0xff] }
 0x563   : >> { %v1127_v63 = vmul.f32 1.442695, %v1126_v62 }
 0x565   : >> { %2269 = vpow2.f32 %v1127_v63 }
 0x567   : >> { %v2268_v0 = vpop.eup %2267 }
 0x568   : >> { %v1010_v1 = vsel %vm843_vm3, %v2268_v0, 0.0  ;;  %v1244_v4 = vpop.xlane.xlu1 %1243 }
 0x569   : >> { %1011 = vadd.xlane.f32.xlu1 %v1010_v1  ;;  %v1245_v5 = vsub.f32 %v1236_v48, %v1244_v4 }
 0x56b   : >> { %v1246_v6 = vmul.f32 1.442695, %v1245_v5 }
 0x56d   : >> { %2271 = vpow2.f32 %v1246_v6 }
 0x56f   : >> { %v2270_v2 = vpop.eup %2269 }
 0x570   : >> { %v1129_v3 = vsel %vm843_vm3, %v2270_v2, 0.0 }
 0x571   : >> { %1130 = vadd.xlane.f32.xlu0 %v1129_v3 }
 0x577   : >> { %v2272_v8 = vpop.eup %2271 }
 0x578   : >> { %v1248_v9 = vsel %vm843_vm3, %v2272_v8, 0.0 }
 0x57a   : >> { %1016 = vrot.lane.b32.xlu1 %v3414_v20, %s2849_s22 }
 0x587   : >> { %902 = vrot.lane.b32.xlu0 %v3414_v20, %s2850_s23  ;;  %s3615_s23 = sld [smem:[#allocation46_spill]] (%p767_p4) }
 0x58b   : >> { %1254 = vrot.lane.b32.xlu0 %v3414_v20, %s2851_s18 }
 0x58d   : > { %s3502_s18 = scalar_lea.hbm (%p767_p4), %s3615_s23, %s1899_s20 }
 0x59e   : >> { %1249 = vadd.xlane.f32.xlu1 %v1248_v9 }
 0x5af   : >> { %1135 = vrot.lane.b32.xlu1 %v3414_v20, %s2852_s1  ;;  %s1614_s1 = sshll.u32 (%p767_p4), %s3389_s30, 4  ;;  %s1615_s1 = int_to_ptr.vmem [resolvable:$true] %s1614_s1 }
 0x5ee   : >> { %v898_v10 = vpop.xlane.xlu0 %897 }
 0x5ef   : >> { %2273 = vrcp.f32 %v898_v10 }
 0x5f6   : >> { %v1012_v11 = vpop.xlane.xlu1 %1011 }
 0x5f7   : >> { %2275 = vrcp.f32 %v1012_v11  ;;  %v2259_v11 = vld [vmem:[#allocation18] sm:$0xff]  }
 0x5f9   : >> { %v2274_v13 = vpop.eup %2273 }
 0x5fa   : >> { %v900_v15 = vmul.f32 %v2274_v13, %v2266_v59  ;;  %v1017_v18 = vpop.permute.xlu1 %1016  ;;  %v2260_v13 = vld [vmem:[#allocation18 + $0x8] sm:$0xff]  }
 0x5fb   : >> { %v1022_v22 = vsel %vm907_vm4, %v1017_v18, 0 }
 0x5fc   : >> { %v901_v19 = vpack.c.bf16 %v900_v15, %v900_v15 }
 0x5fe   : >> { %v1131_v14 = vpop.xlane.xlu0 %1130 }
 0x5ff   : >> { %2277 = vrcp.f32 %v1131_v14 }
 0x601   : >> { %v2276_v21 = vpop.eup %2275 }
 0x602   : >> { %v903_v16 = vpop.permute.xlu0 %902  ;;  %v1014_v20 = vmul.f32 %v2276_v21, %v2268_v0 }
 0x603   : >> { %v909_v17 = vsel %vm907_vm4, %v903_v16, 0 }
 0x604   : >> { %1961 = vmatpush3.bf16.msra.mxu0 %v909_v17  ;;  %v1015_v23 = vpack.c.bf16 %v1014_v20, %v1014_v20  ;;  %v1884_v17 = vld [vmem:[#allocation15] ss:$0 sm:$0xff] }
 0x605   : >> { %1972 = vmatprep.subr.bf16.mxu0 %v2840_v12 }
 0x606   : >> { %v1255_v29 = vpop.permute.xlu0 %1254 }
 0x607   : >> { %1963 = vmatmul.mubr.msk.bf16.vlgmr.msra.gmra.mrb[4].mxu0 %vm843_vm3, %v901_v19  ;;  %v1260_v31 = vsel %vm907_vm4, %v1255_v29, 0  ;;  %v1885_v19 = vld [vmem:[#allocation17] ss:$0 sm:$0xff] }
 0x608   : >> { %1973 = vmatpush3.bf16.msra.mxu0 %v1022_v22  ;;  %1974 = vmatprep.mubr.msk.bf16.mxu0 %vm2841_vm2, %v2840_v12 }
 0x609   : >> { %1984 = vmatprep.subr.bf16.mxu0 %v2840_v12  ;;  %v2278_v24 = vpop.eup %2277 }
 0x60a   : >> { %v1133_v26 = vmul.f32 %v2278_v24, %v2270_v2  ;;  %v2262_v24 = vld [vmem:[#allocation21 + $0x8] sm:$0xff]  }
 0x60c   : >> { %v1134_v30 = vpack.c.bf16 %v1133_v26, %v1133_v26  ;;  %v2264_v26 = vld [vmem:[#allocation21 + $0x18] sm:$0xff]  }
 0x60f   : >> { %1975 = vmatmul.mubr.msk.bf16.vlgmr.msra.gmra.mrb[8].mxu0 %vm843_vm3, %v1015_v23  ;;  %v2261_v23 = vld [vmem:[#allocation21] sm:$0xff]  }
 0x610   : >> { %1986 = vmatprep.mubr.msk.bf16.mxu0 %vm2841_vm2, %v2840_v12 }
 0x62b   : >> { %v1250_v25 = vpop.xlane.xlu1 %1249 }
 0x62c   : >> { %2279 = vrcp.f32 %v1250_v25  ;;  %v2263_v25 = vld [vmem:[#allocation21 + $0x10] sm:$0xff]  }
 0x62f   : >> { %v1136_v27 = vpop.permute.xlu1 %1135 }
 0x630   : >> { %v1141_v28 = vsel %vm907_vm4, %v1136_v27, 0  ;;  %v1886_v27 = vld [vmem:[#allocation20] ss:$0 sm:$0xff] }
 0x631   : >> { %1985 = vmatpush3.bf16.msra.mxu0 %v1141_v28 }
 0x632   : >> { %1996 = vmatprep.subr.bf16.mxu0 %v2840_v12 }
 0x634   : >> { %1987 = vmatmul.mubr.msk.bf16.vlgmr.msra.gmra.mrb[12].mxu0 %vm843_vm3, %v1134_v30 }
 0x635   : >> { %1997 = vmatpush3.bf16.msra.mxu0 %v1260_v31  ;;  %1998 = vmatprep.mubr.msk.bf16.mxu0 %vm2841_vm2, %v2840_v12 }
 0x636   : >> { %v2280_v32 = vpop.eup %2279  ;;  %2010 = vmatprep.subr.bf16.mxu0 %v2840_v12 }
 0x637   : >> { %v1252_v33 = vmul.f32 %v2280_v32, %v2272_v8 }
 0x639   : >> { %v1253_v34 = vpack.c.bf16 %v1252_v33, %v1252_v33 }
 0x63c   : >> { %1999 = vmatmul.mubr.msk.bf16.vlgmr.msra.gmra.mrb[16].mxu0 %vm843_vm3, %v1253_v34 }
 0x63d   : >> { %2014 = vmatprep.mubr.msk.bf16.mxu0 %vm2841_vm2, %v2840_v12  ;;  %2011 = vmatpush3.bf16.msra.mxu0 %v2259_v11 }
 0x63e   : >> { %2012 = vmatprep.subr.bf16.mxu0 %v2840_v12 }
 0x641   : >> { %2013 = vmatpush3.bf16.msra.mxu0 %v2260_v13 }
 0x6da   : >> { %v945_v35 = vpop.f32.mrb[4].mxu0 }
 0x6db   : >> { %v951_v36 = vpack.c.bf16 %v945_v35, %v945_v35  ;;  %v1964_v37 = vpop.f32.mrb[5].mxu0 }
 0x6dc   : >> { %v948_v38 = vpop.f32.mrb[6].mxu0 }
 0x6dd   : >> { %953 = vst.msk [vmem:[#allocation2] sm:$0xf] %vm952_vm5, %v951_v36  ;;  %v1965_v39 = vpop.f32.mrb[7].mxu0 }
 0x6e2   : >> { %v1058_v40 = vpop.f32.mrb[8].mxu0 }
 0x6e3   : >> { %v1902_v41 = vpack.c.bf16 %v1058_v40, %v1058_v40  ;;  %v1976_v42 = vpop.f32.mrb[9].mxu0 }
 0x6e4   : >> { %v1061_v43 = vpop.f32.mrb[10].mxu0 }
 0x6e5   : >> { %1068 = vrot.lane.b32.xlu1 %v1902_v41, %s2853_s17  ;;  %v1977_v44 = vpop.f32.mrb[11].mxu0  ;;  %s1601_s17 = scalar_lea.sflag (%p767_p4), [#allocation5], %s3348_s19 }
 0x707   : >> { %v1177_v47 = vpop.f32.mrb[12].mxu0 }
 0x708   : >> { %v1903_v48 = vpack.c.bf16 %v1177_v47, %v1177_v47  ;;  %v1988_v49 = vpop.f32.mrb[13].mxu0 }
 0x709   : >> { %v1180_v50 = vpop.f32.mrb[14].mxu0 }
 0x70a   : >> { %1187 = vrot.lane.b32.xlu0 %v1903_v48, %s2854_s15  ;;  %v1989_v51 = vpop.f32.mrb[15].mxu0  ;;  %s2709_s15 = scalar_lea.vmem (%p767_p4), %s1615_s1, 128 }
 0x70b   : > { %p2710_p10 = scmp.ne.s32.totalorder (%p767_p4), %s1615_s1, %s2709_s15 }
 0x70d   : > { %p2711_p8 = pnand (%p767_p4), %p2710_p10, %p3616_p11 }
 0x70f   : >> { %v1296_v52 = vpop.f32.mrb[16].mxu0  ;;  %p2712_p5 = pneg (%p767_p4), %p2711_p8 }
 0x710   : >> { %v1904_v53 = vpack.c.bf16 %v1296_v52, %v1296_v52  ;;  %v2000_v54 = vpop.f32.mrb[17].mxu0 }
 0x711   : >> { %v1299_v55 = vpop.f32.mrb[18].mxu0 }
 0x712   : >> { %1306 = vrot.lane.b32.xlu1 %v1904_v53, %s2855_s27  ;;  %v2001_v56 = vpop.f32.mrb[19].mxu0  ;;  %s2713_s27 = sshll.u32 (%p767_p4), %s2856_s0, 4  ;;  %s2714_s27 = int_to_ptr.vmem [resolvable:$false] %s2713_s27 }
 0x713   : > { %s2715_s3 = scalar_lea.vmem (%p767_p4), %s2714_s27, 256  ;;  %p2716_p7 = scmp.lt.s32.totalorder (%p767_p4), %s1615_s1, %s2714_s27 }
 0x714   : > { %p2717_p6 = scmp.lt.s32.totalorder (%p767_p4), %s2715_s3, %s2709_s15 }
 0x716   : > { %p2718_p9 = por (%p767_p4), %p2717_p6, %p2716_p7 }
 0x718   : > { %p2719_p12 = pnand (%p767_p4), %p2718_p9, %p2712_p5 }
 0x757   : >> { %v1069_v57 = vpop.permute.xlu1 %1068 }
 0x758   : >> { %1072 = vst.msk [vmem:[#allocation2] sm:$0xf] %vm1071_vm6, %v1069_v57 }
 0x77c   : >> { %v1188_v58 = vpop.permute.xlu0 %1187 }
 0x77d   : >> { %1191 = vst.msk [vmem:[#allocation2] sm:$0xf] %vm1190_vm7, %v1188_v58 }
 0x784   : >> { %v1307_v59 = vpop.permute.xlu1 %1306 }
 0x785   : >> { %1310 = vst.msk [vmem:[#allocation2] sm:$0xf] %vm1309_vm8, %v1307_v59  ;;  %v1896_v59 = vld [vmem:[#allocation24] ss:$0 sm:$0xff] }
 0x78c   : >> { %v1311_v60 = vld [vmem:[#allocation2] sm:$0xf] }
 0x78d   : >> { %2007 = vmatmul.mubr.msk.bf16.vlgmr.msra.gmra.mrb[16].mxu1 %vm721_vm1, %v1311_v60 }
 0x78e   : >> { %2026 = vmatprep.mubr.msk.bf16.mxu1 %vm2841_vm2, %v2840_v12  ;;  %2019 = vmatpush3.bf16.msra.mxu1 %v2261_v23 }
 0x78f   : >> { %2020 = vmatprep.subr.bf16.mxu1 %v2840_v12 }
 0x792   : >> { %2021 = vmatpush3.bf16.msra.mxu1 %v2262_v24 }
 0x793   : >> { %2022 = vmatprep.subr.bf16.mxu1 %v2840_v12 }
 0x796   : >> { %2023 = vmatpush3.bf16.msra.mxu1 %v2263_v25 }
 0x797   : >> { %2024 = vmatprep.subr.bf16.mxu1 %v2840_v12  ;;  %v1890_v12 = vld [vmem:[#allocation23] ss:$0 sm:$0xff] }
 0x79a   : >> { %2025 = vmatpush3.bf16.msra.mxu1 %v2264_v26 }
 0x860   : >> { %v1372_v62 = vpop.f32.mrb[16].mxu1 }
 0x861   : >> { %v1373_v63 = vadd.f32 %v1880_v61, %v1372_v62  ;;  %v2008_v0 = vpop.f32.mrb[17].mxu1  ;;  %v1897_v61 = vld [vmem:[#allocation26] ss:$0 sm:$0xff] }
 0x862   : >> { %v1375_v1 = vpop.f32.mrb[18].mxu1 }
 0x863   : >> { %v2009_v2 = vpop.f32.mrb[19].mxu1  ;;  %v1378_v3 = vadd.f32 %v2815_v7, %v1373_v63 }
 0x865   : >> { %v1381_v4 = vsel %vm721_vm1, %v1378_v3, 0.0 }
 0x866   : >> { %1382 = vadd.xlane.f32.xlu0 %v1381_v4 }
 0x8f3   : >> { %v1383_v5 = vpop.xlane.xlu0 %1382 }
 0x8f4   : >> { %v1385_v6 = vmul.f32 0.03125, %v1383_v5 }
 0x8f6   : >> { %v1386_v8 = vsub.f32 %v1378_v3, %v1385_v6 }
 0x8f8   : >> { %v1387_v9 = vmul.f32 %v1386_v8, %v1386_v8 }
 0x8fa   : >> { %v1388_v10 = vsel %vm721_vm1, %v1387_v9, 0.0 }
 0x8fb   : >> { %1389 = vadd.xlane.f32.xlu1 %v1388_v10 }
 0x988   : >> { %v1390_v14 = vpop.xlane.xlu1 %1389 }
 0x989   : >> { %v1391_v15 = vmul.f32 0.03125, %v1390_v14 }
 0x98b   : >> { %v1392_v16 = vadd.f32 1e-12, %v1391_v15 }
 0x98d   : >> { %2281 = vrsqrt.f32 %v1392_v16 }
 0x997   : >> { %v2282_v7 = vpop.eup %2281 }
 0x998   : >> { %v1394_v18 = vmul.f32 %v2282_v7, %v1386_v8 }
 0x99a   : >> { %v1401_v21 = vmul.f32 %v1884_v17, %v1394_v18 }
 0x99c   : >> { %v1408_v22 = vadd.f32 %v1885_v19, %v1401_v21 }
 0x99e   : >> { %v1409_v20 = vpack.c.bf16 %v1408_v22, %v1408_v22 }
 0x9a0   : >> { %2015 = vmatmul.mubr.msk.bf16.vlgmr.msra.gmra.mrb[20].mxu0 %vm721_vm1, %v1409_v20 }
 0xa73   : >> { %v1470_v28 = vpop.f32.mrb[20].mxu0 }
 0xa74   : >> { %v1471_v29 = vadd.f32 %v1886_v27, %v1470_v28  ;;  %v2016_v30 = vpop.f32.mrb[21].mxu0 }
 0xa75   : >> { %v1473_v31 = vpop.f32.mrb[22].mxu0 }
 0xa76   : >> { %v1477_v32 = vmul.f32 0.044715, %v1471_v29  ;;  %v2017_v33 = vpop.f32.mrb[23].mxu0  ;;  %v1476_v39 = vmul.f32 0.5, %v1471_v29 }
 0xa78   : >> { %v1478_v34 = vmul.f32 %v1477_v32, %v1471_v29 }
 0xa7a   : >> { %v1479_v35 = vmul.f32 %v1478_v34, %v1471_v29 }
 0xa7c   : >> { %v1480_v36 = vadd.f32 %v1479_v35, %v1471_v29 }
 0xa7e   : >> { %v1481_v37 = vmul.f32 0.7978846, %v1480_v36 }
 0xa80   : >> { %2283 = vtanh.f32 %v1481_v37 }
 0xa8a   : >> { %v2284_v38 = vpop.eup %2283 }
 0xa8b   : >> { %v1483_v40 = vadd.f32 1.0, %v2284_v38 }
 0xa8d   : >> { %v1484_v41 = vmul.f32 %v1483_v40, %v1476_v39 }
 0xa8f   : >> { %v1485_v42 = vpack.c.bf16 %v1484_v41, %v1484_v41 }
 0xa91   : >> { %2027 = vmatmul.mubr.msk.bf16.vlgmr.msra.gmra.mrb[20].mxu1 %vm1525_vm9, %v1485_v42 }
 0xb64   : >> { %v1563_v43 = vpop.f32.mrb[20].mxu1 }
 0xb65   : >> { %v1564_v44 = vadd.f32 %v1890_v12, %v1563_v43  ;;  %v2028_v45 = vpop.f32.mrb[21].mxu1 }
 0xb66   : >> { %v1566_v46 = vpop.f32.mrb[22].mxu1 }
 0xb67   : >> { %v2029_v47 = vpop.f32.mrb[23].mxu1  ;;  %v1569_v48 = vadd.f32 %v1564_v44, %v1408_v22 }
 0xb69   : >> { %v1572_v49 = vsel %vm721_vm1, %v1569_v48, 0.0 }
 0xb6a   : >> { %1573 = vadd.xlane.f32.xlu0 %v1572_v49 }
 0xbf7   : >> { %v1574_v50 = vpop.xlane.xlu0 %1573 }
 0xbf8   : >> { %v1575_v51 = vmul.f32 0.03125, %v1574_v50 }
 0xbfa   : >> { %v1576_v52 = vsub.f32 %v1569_v48, %v1575_v51 }
 0xbfc   : >> { %v1577_v53 = vmul.f32 %v1576_v52, %v1576_v52 }
 0xbfe   : >> { %v1578_v54 = vsel %vm721_vm1, %v1577_v53, 0.0 }
 0xbff   : >> { %1579 = vadd.xlane.f32.xlu0 %v1578_v54 }
 0xc8c   : >> { %v1580_v55 = vpop.xlane.xlu0 %1579 }
 0xc8d   : >> { %v1581_v56 = vmul.f32 0.03125, %v1580_v55 }
 0xc8f   : >> { %v1582_v57 = vadd.f32 1e-12, %v1581_v56 }
 0xc91   : >> { %2285 = vrsqrt.f32 %v1582_v57 }
 0xc9b   : >> { %v2286_v58 = vpop.eup %2285 }
 0xc9c   : >> { %v1584_v60 = vmul.f32 %v2286_v58, %v1576_v52  ;;  %769 = sbr.rel (!%p767_p4) target bundleno = 658 (0x292), region = 188 }
 0xc9e   : >> { %v1591_v62 = vmul.f32 %v1896_v59, %v1584_v60 }
 0xca0   : >> { %v1598_v63 = vadd.f32 %v1897_v61, %v1591_v62  }
 0xca2   : >> { %v3613_v7 = vmov %v1598_v63  ;;  %1599 = vst.msk [vmem:[%s3389_s30] sm:$0xff] (%p767_p4), %vm721_vm1, %v1598_v63 }
 0xca3   : > { %2722 = shalt.err (!%p2719_p12)
}
 0xca4   : > { %s2723_s19 = scalar_lea.hbm %s3502_s18, 128  ;;  %s2727_s20 = scalar_lea.hbm %s3615_s23, 256 }
 0xca5   : > { %p2724_p13 = scmp.ne.s32.totalorder %s3502_s18, %s2723_s19  ;;  %p2728_p2 = scmp.lt.u32.totalorder %s3502_s18, %s3615_s23 }
 0xca6   : > { %p2729_p0 = scmp.lt.u32.totalorder %s2727_s20, %s2723_s19  ;;  %p2731_p10 = scmp.lt.u32.totalorder %s2723_s19, %s3502_s18 }
 0xca7   : > { %p2725_p1 = pnand %p2724_p13, %p3616_p11 }
 0xca8   : > { %p2730_p4 = por %p2729_p0, %p2728_p2 }
 0xca9   : > { %p2726_p3 = pneg %p2725_p1 }
 0xcaa   : > { %p2732_p8 = por %p2731_p10, %p2730_p4 }
 0xcac   : > { %p2733_p5 = pnand %p2732_p8, %p2726_p3 }
 0xcae   : > { %2736 = shalt.err (!%p2733_p5)
}
 0xcaf   : > { %2088 = dma.vmem_to_hbm [thread:$0]  (%p3616_p11), %s1615_s1, 128, %s3502_s18, %s1601_s17  }
 0xcb0 PF: > { %s3617_s3 = sld [smem:[#allocation37_spill]]  ;;  %p3618_p7 = scmp.ne.s32.totalorder %s3592_s25, 0 }
 0xcb1   : > { %p3619_p6 = scmp.ge.s32.totalorder %s2811_s21, 2 }
 0xcb3   : > { %p2138_p9 = pnand %p3619_p6, %p3618_p7 }
 0xcb6   : > { %s1626_s15 = sand.u32 1, %s3617_s3  }
 0xcb7   : > { %s1627_s0 = scalar_lea.sflag [#allocation5], %s1626_s15 }
 0xcb8   : > { %2794 = dma.done.wait (!%p2138_p9), %s1627_s0, 128  }
 0xcb9   : > { %2796 = vsyncadd (!%p2138_p9), %s1627_s0, 4294967168  ;;  %s3620_s18 = sld [smem:[#allocation38_spill]]  ;;  %s3621_s19 = sld [smem:[#allocation39_spill]] }
 0xcba   : > { %p35_p12 = scmp.ge.s32.totalorder %s3272_s28, 4   ;;  %s3622_s20 = smov %s3283_s24 }
 0xcbb   : > { %s3623_s21 = smov %s3272_s28 }
 0xcbc   :  { %37 = sbr.rel (!%p35_p12) target bundleno = 18 (0x12), region = 199 }
 0xcc3   :  { %1632 = vsyncpa [#allocation4], 1 }
 0xcc4   :  { %1634 = vsyncpa [#allocation4 + $0x1], 1 }
 0xcc5   :  { %1635 = vsyncpa [#allocation7], 1 }
 0xcc6   :  { %1636 = vsyncpa [#allocation10], 1 }
 0xcc7   :  { %1637 = vsyncpa [#allocation13], 1 }
 0xcc8   :  { %1638 = vsyncpa [#allocation16], 1 }
 0xcc9   :  { %1639 = vsyncpa [#allocation19], 1 }
 0xcca   :  { %1640 = vsyncpa [#allocation22], 1 }
 0xccb   :  { %1641 = vsyncpa [#allocation25], 1 }
 0xccc   :  { %1642 = vsyncpa [#allocation5], 1 }
 0xccd   :  { %1644 = vsyncpa [#allocation5 + $0x1], 1 }

</bundles_post_ra>
